<compile_context>
chip_gen: v7x
topology: tpu7x:2x2x1
jax: 0.10.0
libtpu: 0.0.40
codegen_flags: <defaults>
</compile_context>

<pallas_src>
import math
import functools

import jax
import jax.numpy as jnp
from jax import lax
from jax.experimental import pallas as pl
from jax.experimental.pallas import tpu as pltpu


# ---------------------------------------------------------------------------
# in-kernel math helpers
# ---------------------------------------------------------------------------

def _gelu_exact(x):
    # PyTorch F.gelu default (erf-based, exact).
    return 0.5 * x * (1.0 + lax.erf(x * (1.0 / math.sqrt(2.0))))


def _layernorm(x, gamma, beta, eps=1e-5):
    mean = jnp.mean(x, axis=-1, keepdims=True)
    var = jnp.mean((x - mean) ** 2, axis=-1, keepdims=True)
    return (x - mean) * lax.rsqrt(var + eps) * gamma + beta


# ---------------------------------------------------------------------------
# fused Pallas kernel: grid = (num_layers,)
# ---------------------------------------------------------------------------

def fused_transformer_kernel(
    x_ref,                                                   # (B*S, H)   f32
    wqkv_ref, bqkv_ref,                                      # per-layer fused QKV
    wo_ref, bo_ref,                                          # per-layer out-proj
    g1_ref, be1_ref,                                         # per-layer LN1
    w1_ref, b1_ref, w2_ref, b2_ref,                          # per-layer FFN
    g2_ref, be2_ref,                                         # per-layer LN2
    gf_ref, bf_ref, wout_ref, bout_ref,                      # final LN + vocab head
    o_ref,                                                   # (B*S, Vp)  f32
    x_vmem,                                                  # scratch (B*S, H) f32
    *, batch: int, seq: int, num_heads: int, head_dim: int,
):
    l = pl.program_id(0)
    n_layers = pl.num_programs(0)

    B, S, nh, hd = batch, seq, num_heads, head_dim
    H = nh * hd
    BS = B * S
    scale = 1.0 / math.sqrt(hd)
    bf16 = jnp.bfloat16

    # Load activations into the resident VMEM scratch at the first layer step.
    @pl.when(l == 0)
    def _():
        x_vmem[...] = x_ref[...]

    x = x_vmem[...]                                          # (BS, H) f32

    # ---- fused QKV projection: one lane-dense MXU matmul -------------------
    qkv = jnp.dot(x.astype(bf16), wqkv_ref[0],
                  preferred_element_type=jnp.float32) + bqkv_ref[0]   # (BS, 3H)

    def split_heads(t):                                      # (BS, H) -> (nh*B, S, hd)
        heads = [t[:, h * hd:(h + 1) * hd].reshape(B, S, hd) for h in range(nh)]
        return jnp.stack(heads, axis=0).reshape(nh * B, S, hd)

    q = split_heads(qkv[:, 0 * H:1 * H])                     # f32
    k = split_heads(qkv[:, 1 * H:2 * H])
    v = split_heads(qkv[:, 2 * H:3 * H])

    # ---- attention (no mask, dropout = identity) ----------------------------
    scores = jnp.einsum("bqd,bkd->bqk", q.astype(bf16), k.astype(bf16),
                        preferred_element_type=jnp.float32) * scale   # (nh*B, S, S)
    scores = scores - jnp.max(scores, axis=-1, keepdims=True)
    p = jnp.exp(scores)
    p = p / jnp.sum(p, axis=-1, keepdims=True)               # exact softmax

    ctx = jnp.einsum("bqk,bkd->bqd", p.astype(bf16), v.astype(bf16),
                     preferred_element_type=jnp.float32)     # (nh*B, S, hd)

    # merge heads: column block h of the hidden axis = head h (torch layout)
    ctx4 = ctx.reshape(nh, B, S, hd)
    ctx_m = jnp.concatenate([ctx4[h].reshape(BS, hd) for h in range(nh)],
                            axis=-1)                         # (BS, H) f32

    # single lane-dense output projection
    attn = jnp.dot(ctx_m.astype(bf16), wo_ref[0],
                   preferred_element_type=jnp.float32) + bo_ref[0]    # (BS, H)

    # ---- residual + LayerNorm 1 ---------------------------------------------
    x1 = _layernorm(x + attn, g1_ref[0], be1_ref[0])

    # ---- feed forward (exact GELU) ------------------------------------------
    h1 = jnp.dot(x1.astype(bf16), w1_ref[0],
                 preferred_element_type=jnp.float32) + b1_ref[0]      # (BS, 4H)
    h1 = _gelu_exact(h1)
    ff = jnp.dot(h1.astype(bf16), w2_ref[0],
                 preferred_element_type=jnp.float32) + b2_ref[0]      # (BS, H)

    # ---- residual + LayerNorm 2 ---------------------------------------------
    x2 = _layernorm(x1 + ff, g2_ref[0], be2_ref[0])
    x_vmem[...] = x2

    # ---- final LayerNorm + (padded, lane-dense) vocab projection ------------
    @pl.when(l == n_layers - 1)
    def _():
        xn = _layernorm(x2, gf_ref[...], bf_ref[...])
        o_ref[...] = jnp.dot(xn.astype(bf16), wout_ref[...],
                             preferred_element_type=jnp.float32) + bout_ref[...]


# ---------------------------------------------------------------------------
# pallas_call wrapper
# ---------------------------------------------------------------------------

def _layer_spec(arr):
    # leading dim = layer axis; block is one layer slice, rest full.
    nd = arr.ndim
    return pl.BlockSpec((1,) + tuple(arr.shape[1:]),
                        lambda l, _nd=nd: (l,) + (0,) * (_nd - 1))


def _const_spec(arr):
    nd = arr.ndim
    return pl.BlockSpec(tuple(arr.shape), lambda l, _nd=nd: (0,) * _nd)


def run_fused_transformer(x2d, layer_args, final_args, *, batch, seq, num_heads):
    BS, H = x2d.shape
    hd = H // num_heads
    L = layer_args[0].shape[0]
    Vp = final_args[2].shape[1]

    in_specs = [pl.BlockSpec((BS, H), lambda l: (0, 0))]
    in_specs += [_layer_spec(a) for a in layer_args]
    in_specs += [_const_spec(a) for a in final_args]

    kernel = functools.partial(fused_transformer_kernel,
                               batch=batch, seq=seq,
                               num_heads=num_heads, head_dim=hd)

    return pl.pallas_call(
        kernel,
        out_shape=jax.ShapeDtypeStruct((BS, Vp), jnp.float32),
        grid=(L,),
        in_specs=in_specs,
        out_specs=pl.BlockSpec((BS, Vp), lambda l: (0, 0)),
        scratch_shapes=[pltpu.VMEM((BS, H), jnp.float32)],
        compiler_params=pltpu.CompilerParams(
            dimension_semantics=("arbitrary",)),
        # TODO(synk): for realistic H / V, re-budget VMEM (v7x: 64 MiB) by
        # K-tiling the FFN and splitting the vocab projection into its own
        # vocab-tiled pallas_call; at toy shapes everything trivially fits.
    )(x2d, *layer_args, *final_args)


# ---------------------------------------------------------------------------
# parameter init + one-time fused-weight layout (plain JAX)
# ---------------------------------------------------------------------------

def init_params(key, config):
    H = config["hidden_size"]
    V = config["vocab_size"]
    L = config["num_layers"]

    def dense(k, fan_in, fan_out):
        # Linear weight stored as (in, out); y = x @ W + b  (== torch x @ W.T + b)
        return 0.02 * jax.random.normal(k, (fan_in, fan_out), jnp.float32)

    keys = jax.random.split(key, 2 + L)
    params = {
        "embedding": 0.02 * jax.random.normal(keys[0], (V, H), jnp.float32),
        "pos_embedding": jnp.zeros((1, 1024, H), jnp.float32),  # torch.zeros init
    }
    layers = []
    for li in range(L):
        lk = jax.random.split(keys[2 + li], 8)
        layers.append({
            "wq": dense(lk[0], H, H), "bq": jnp.zeros((1, H), jnp.float32),
            "wk": dense(lk[1], H, H), "bk": jnp.zeros((1, H), jnp.float32),
            "wv": dense(lk[2], H, H), "bv": jnp.zeros((1, H), jnp.float32),
            "wo": dense(lk[3], H, H), "bo": jnp.zeros((1, H), jnp.float32),
            "ln1_g": jnp.ones((1, H), jnp.float32),
            "ln1_b": jnp.zeros((1, H), jnp.float32),
            "w1": dense(lk[4], H, 4 * H), "b1": jnp.zeros((1, 4 * H), jnp.float32),
            "w2": dense(lk[5], 4 * H, H), "b2": jnp.zeros((1, H), jnp.float32),
            "ln2_g": jnp.ones((1, H), jnp.float32),
            "ln2_b": jnp.zeros((1, H), jnp.float32),
        })
    params["layers"] = layers

    fk = jax.random.split(keys[1], 2)
    params["ln_g"] = jnp.ones((1, H), jnp.float32)
    params["ln_b"] = jnp.zeros((1, H), jnp.float32)
    params["w_out"] = dense(fk[0], H, V)
    params["b_out"] = jnp.zeros((1, V), jnp.float32)
    return params


def prepare_fused_params(params):
    """One-time layout: stack per-layer weights on a leading layer axis, fuse
    Q/K/V into one (H, 3H) matrix, pad vocab to a multiple of 128, cast matmul
    weights to bf16.  Called ONCE (hoisted out of the forward)."""
    layers = params["layers"]
    bf16 = jnp.bfloat16

    def stack(name):
        return jnp.stack([lp[name] for lp in layers], axis=0)

    wqkv = jnp.concatenate([stack("wq"), stack("wk"), stack("wv")], axis=-1)  # (L,H,3H)
    bqkv = jnp.concatenate([stack("bq"), stack("bk"), stack("bv")], axis=-1)  # (L,1,3H)

    layer_args = [
        wqkv.astype(bf16), bqkv,
        stack("wo").astype(bf16), stack("bo"),
        stack("ln1_g"), stack("ln1_b"),
        stack("w1").astype(bf16), stack("b1"),
        stack("w2").astype(bf16), stack("b2"),
        stack("ln2_g"), stack("ln2_b"),
    ]

    V = params["w_out"].shape[1]
    Vp = ((V + 127) // 128) * 128                       # lane-dense logits store
    w_out_p = jnp.pad(params["w_out"], ((0, 0), (0, Vp - V)))
    b_out_p = jnp.pad(params["b_out"], ((0, 0), (0, Vp - V)))
    final_args = [params["ln_g"], params["ln_b"], w_out_p.astype(bf16), b_out_p]

    layer_args = [jax.block_until_ready(a) for a in layer_args]
    final_args = [jax.block_until_ready(a) for a in final_args]
    return layer_args, final_args, V, Vp


def simple_transformer_forward(token_ids, params, fused, config):
    """token_ids: int32 (B, S).  `fused` = prepare_fused_params(params)."""
    layer_args, final_args, V, Vp = fused
    B, S = token_ids.shape
    H = config["hidden_size"]
    assert S <= params["pos_embedding"].shape[1], "sequence longer than pos table"

    # glue: embedding lookup + positional embedding (dropout = identity)
    x = jnp.take(params["embedding"], token_ids, axis=0)     # (B, S, H) f32
    x = x + params["pos_embedding"][:, :S, :]
    x2d = x.reshape(B * S, H)

    logits_p = run_fused_transformer(
        x2d, layer_args, final_args,
        batch=B, seq=S, num_heads=config["num_heads"])       # (B*S, Vp)
    return logits_p.reshape(B, S, Vp)[:, :, :V]


# ---------------------------------------------------------------------------
# main
# ---------------------------------------------------------------------------

if __name__ == "__main__":
    config = {
        "vocab_size": 64,
        "hidden_size": 32,
        "num_heads": 4,
        "num_layers": 2,
        "dropout": 0.1,   # identity at inference / eval
    }
    B, S = 2, 8

    key = jax.random.PRNGKey(0)
    pkey, dkey = jax.random.split(key)
    params = init_params(pkey, config)

    # hoisted one-time weight re-layout (not re-done per forward call)
    fused = prepare_fused_params(params)

    token_ids = jax.random.randint(dkey, (B, S), 0, config["vocab_size"],
                                   dtype=jnp.int32)

    logits = simple_transformer_forward(token_ids, params, fused, config)
    logits = jax.block_until_ready(logits)
    assert logits.shape == (B, S, config["vocab_size"])
    assert jnp.all(jnp.isfinite(logits))
    print("KERNEL_OK")
</pallas_src>

<mosaic_0001>
module attributes {stable_mosaic.version = 11 : i64} {
  func.func @fused_transformer_kernel(%arg0: i32, %arg1: memref<16x32xf32, #tpu.memory_space<vmem>>, %arg2: memref<1x32x96xbf16, #tpu.memory_space<vmem>>, %arg3: memref<1x1x96xf32, #tpu.memory_space<vmem>>, %arg4: memref<1x32x32xbf16, #tpu.memory_space<vmem>>, %arg5: memref<1x1x32xf32, #tpu.memory_space<vmem>>, %arg6: memref<1x1x32xf32, #tpu.memory_space<vmem>>, %arg7: memref<1x1x32xf32, #tpu.memory_space<vmem>>, %arg8: memref<1x32x128xbf16, #tpu.memory_space<vmem>>, %arg9: memref<1x1x128xf32, #tpu.memory_space<vmem>>, %arg10: memref<1x128x32xbf16, #tpu.memory_space<vmem>>, %arg11: memref<1x1x32xf32, #tpu.memory_space<vmem>>, %arg12: memref<1x1x32xf32, #tpu.memory_space<vmem>>, %arg13: memref<1x1x32xf32, #tpu.memory_space<vmem>>, %arg14: memref<1x32xf32, #tpu.memory_space<vmem>>, %arg15: memref<1x32xf32, #tpu.memory_space<vmem>>, %arg16: memref<32x128xbf16, #tpu.memory_space<vmem>>, %arg17: memref<1x128xf32, #tpu.memory_space<vmem>>, %arg18: memref<16x128xf32, #tpu.memory_space<vmem>>, %arg19: memref<16x32xf32, #tpu.memory_space<vmem>>) attributes {dimension_semantics = [#tpu.dimension_semantics<arbitrary>], iteration_bounds = array<i64: 2>, scalar_prefetch = 0 : i64, scratch_operands = 1 : i64, tpu.core_type = #tpu.core_type<tc>, window_params = [{pipeline_mode = #tpu.pipeline_mode<synchronous>, transform_indices = @transform_0, window_bounds = array<i64: 16, 32>}, {transform_indices = @transform_1, window_bounds = array<i64: 1, 32, 96>}, {transform_indices = @transform_2, window_bounds = array<i64: 1, 1, 96>}, {transform_indices = @transform_3, window_bounds = array<i64: 1, 32, 32>}, {transform_indices = @transform_4, window_bounds = array<i64: 1, 1, 32>}, {transform_indices = @transform_5, window_bounds = array<i64: 1, 1, 32>}, {transform_indices = @transform_6, window_bounds = array<i64: 1, 1, 32>}, {transform_indices = @transform_7, window_bounds = array<i64: 1, 32, 128>}, {transform_indices = @transform_8, window_bounds = array<i64: 1, 1, 128>}, {transform_indices = @transform_9, window_bounds = array<i64: 1, 128, 32>}, {transform_indices = @transform_10, window_bounds = array<i64: 1, 1, 32>}, {transform_indices = @transform_11, window_bounds = array<i64: 1, 1, 32>}, {transform_indices = @transform_12, window_bounds = array<i64: 1, 1, 32>}, {pipeline_mode = #tpu.pipeline_mode<synchronous>, transform_indices = @transform_13, window_bounds = array<i64: 1, 32>}, {pipeline_mode = #tpu.pipeline_mode<synchronous>, transform_indices = @transform_14, window_bounds = array<i64: 1, 32>}, {pipeline_mode = #tpu.pipeline_mode<synchronous>, transform_indices = @transform_15, window_bounds = array<i64: 32, 128>}, {pipeline_mode = #tpu.pipeline_mode<synchronous>, transform_indices = @transform_16, window_bounds = array<i64: 1, 128>}, {pipeline_mode = #tpu.pipeline_mode<synchronous>, transform_indices = @transform_17, window_bounds = array<i64: 16, 128>}]} {
    %c0_i32 = arith.constant 0 : i32
    %0 = arith.cmpi eq, %arg0, %c0_i32 : i32
    %1 = arith.extui %0 : i1 to i32
    %c0_i32_0 = arith.constant 0 : i32
    %2 = arith.cmpi ne, %1, %c0_i32_0 : i32
    scf.if %2 {
      %c0_62 = arith.constant 0 : index
      %c0_63 = arith.constant 0 : index
      %178 = vector.load %arg1[%c0_62, %c0_63] : memref<16x32xf32, #tpu.memory_space<vmem>>, vector<16x32xf32>
      %c0_64 = arith.constant 0 : index
      %c0_65 = arith.constant 0 : index
      %179 = vector.load %arg19[%c0_64, %c0_65] : memref<16x32xf32, #tpu.memory_space<vmem>>, vector<16x32xf32>
      tpu.vector_store %arg19[%c0_64, %c0_65], %178 {strides = array<i32>} : memref<16x32xf32, #tpu.memory_space<vmem>>, vector<16x32xf32>,
    } else {
    }
    %c0 = arith.constant 0 : index
    %c0_1 = arith.constant 0 : index
    %3 = vector.load %arg19[%c0, %c0_1] : memref<16x32xf32, #tpu.memory_space<vmem>>, vector<16x32xf32>
    %4 = arith.truncf %3 : vector<16x32xf32> to vector<16x32xbf16>
    %c0_2 = arith.constant 0 : index
    %c0_3 = arith.constant 0 : index
    %c0_4 = arith.constant 0 : index
    %5 = vector.load %arg2[%c0_2, %c0_3, %c0_4] : memref<1x32x96xbf16, #tpu.memory_space<vmem>>, vector<1x32x96xbf16>
    %6 = vector.shape_cast %5 : vector<1x32x96xbf16> to vector<32x96xbf16>
    %cst = arith.constant dense<0.000000e+00> : vector<16x96xf32>
    %7 = tpu.matmul %4, %6, %cst {dimension_numbers = #tpu.dot_dimension_numbers<[1], [0], [0], [1], [0, 0, 1, 1], [], []>} : vector<16x32xbf16>, vector<32x96xbf16>, vector<16x96xf32> -> vector<16x96xf32>
    %c0_5 = arith.constant 0 : index
    %c0_6 = arith.constant 0 : index
    %c0_7 = arith.constant 0 : index
    %8 = vector.load %arg3[%c0_5, %c0_6, %c0_7] : memref<1x1x96xf32, #tpu.memory_space<vmem>>, vector<1x1x96xf32>
    %9 = vector.shape_cast %8 : vector<1x1x96xf32> to vector<1x96xf32>
    %10 = vector.broadcast %9 : vector<1x96xf32> to vector<16x96xf32>
    %11 = arith.addf %7, %10 : vector<16x96xf32>
    %12 = vector.extract_strided_slice %11 {offsets = [0, 0], sizes = [16, 32], strides = [1, 1]} : vector<16x96xf32> to vector<16x32xf32>
    %13 = vector.extract_strided_slice %12 {offsets = [0, 0], sizes = [16, 8], strides = [1, 1]} : vector<16x32xf32> to vector<16x8xf32>
    %14 = vector.shape_cast %13 : vector<16x8xf32> to vector<2x8x8xf32>
    %15 = vector.extract_strided_slice %12 {offsets = [0, 8], sizes = [16, 8], strides = [1, 1]} : vector<16x32xf32> to vector<16x8xf32>
    %16 = vector.shape_cast %15 : vector<16x8xf32> to vector<2x8x8xf32>
    %17 = vector.extract_strided_slice %12 {offsets = [0, 16], sizes = [16, 8], strides = [1, 1]} : vector<16x32xf32> to vector<16x8xf32>
    %18 = vector.shape_cast %17 : vector<16x8xf32> to vector<2x8x8xf32>
    %19 = vector.extract_strided_slice %12 {offsets = [0, 24], sizes = [16, 8], strides = [1, 1]} : vector<16x32xf32> to vector<16x8xf32>
    %20 = vector.shape_cast %19 : vector<16x8xf32> to vector<2x8x8xf32>
    %21 = vector.shape_cast %14 : vector<2x8x8xf32> to vector<1x2x8x8xf32>
    %22 = vector.shape_cast %16 : vector<2x8x8xf32> to vector<1x2x8x8xf32>
    %23 = vector.shape_cast %18 : vector<2x8x8xf32> to vector<1x2x8x8xf32>
    %24 = vector.shape_cast %20 : vector<2x8x8xf32> to vector<1x2x8x8xf32>
    %25 = tpu.concatenate %21, %22, %23, %24 in 0 : vector<1x2x8x8xf32>, vector<1x2x8x8xf32>, vector<1x2x8x8xf32>, vector<1x2x8x8xf32> -> vector<4x2x8x8xf32>
    %26 = vector.shape_cast %25 : vector<4x2x8x8xf32> to vector<8x8x8xf32>
    %27 = vector.extract_strided_slice %11 {offsets = [0, 32], sizes = [16, 32], strides = [1, 1]} : vector<16x96xf32> to vector<16x32xf32>
    %28 = vector.extract_strided_slice %27 {offsets = [0, 0], sizes = [16, 8], strides = [1, 1]} : vector<16x32xf32> to vector<16x8xf32>
    %29 = vector.shape_cast %28 : vector<16x8xf32> to vector<2x8x8xf32>
    %30 = vector.extract_strided_slice %27 {offsets = [0, 8], sizes = [16, 8], strides = [1, 1]} : vector<16x32xf32> to vector<16x8xf32>
    %31 = vector.shape_cast %30 : vector<16x8xf32> to vector<2x8x8xf32>
    %32 = vector.extract_strided_slice %27 {offsets = [0, 16], sizes = [16, 8], strides = [1, 1]} : vector<16x32xf32> to vector<16x8xf32>
    %33 = vector.shape_cast %32 : vector<16x8xf32> to vector<2x8x8xf32>
    %34 = vector.extract_strided_slice %27 {offsets = [0, 24], sizes = [16, 8], strides = [1, 1]} : vector<16x32xf32> to vector<16x8xf32>
    %35 = vector.shape_cast %34 : vector<16x8xf32> to vector<2x8x8xf32>
    %36 = vector.shape_cast %29 : vector<2x8x8xf32> to vector<1x2x8x8xf32>
    %37 = vector.shape_cast %31 : vector<2x8x8xf32> to vector<1x2x8x8xf32>
    %38 = vector.shape_cast %33 : vector<2x8x8xf32> to vector<1x2x8x8xf32>
    %39 = vector.shape_cast %35 : vector<2x8x8xf32> to vector<1x2x8x8xf32>
    %40 = tpu.concatenate %36, %37, %38, %39 in 0 : vector<1x2x8x8xf32>, vector<1x2x8x8xf32>, vector<1x2x8x8xf32>, vector<1x2x8x8xf32> -> vector<4x2x8x8xf32>
    %41 = vector.shape_cast %40 : vector<4x2x8x8xf32> to vector<8x8x8xf32>
    %42 = vector.extract_strided_slice %11 {offsets = [0, 64], sizes = [16, 32], strides = [1, 1]} : vector<16x96xf32> to vector<16x32xf32>
    %43 = vector.extract_strided_slice %42 {offsets = [0, 0], sizes = [16, 8], strides = [1, 1]} : vector<16x32xf32> to vector<16x8xf32>
    %44 = vector.shape_cast %43 : vector<16x8xf32> to vector<2x8x8xf32>
    %45 = vector.extract_strided_slice %42 {offsets = [0, 8], sizes = [16, 8], strides = [1, 1]} : vector<16x32xf32> to vector<16x8xf32>
    %46 = vector.shape_cast %45 : vector<16x8xf32> to vector<2x8x8xf32>
    %47 = vector.extract_strided_slice %42 {offsets = [0, 16], sizes = [16, 8], strides = [1, 1]} : vector<16x32xf32> to vector<16x8xf32>
    %48 = vector.shape_cast %47 : vector<16x8xf32> to vector<2x8x8xf32>
    %49 = vector.extract_strided_slice %42 {offsets = [0, 24], sizes = [16, 8], strides = [1, 1]} : vector<16x32xf32> to vector<16x8xf32>
    %50 = vector.shape_cast %49 : vector<16x8xf32> to vector<2x8x8xf32>
    %51 = vector.shape_cast %44 : vector<2x8x8xf32> to vector<1x2x8x8xf32>
    %52 = vector.shape_cast %46 : vector<2x8x8xf32> to vector<1x2x8x8xf32>
    %53 = vector.shape_cast %48 : vector<2x8x8xf32> to vector<1x2x8x8xf32>
    %54 = vector.shape_cast %50 : vector<2x8x8xf32> to vector<1x2x8x8xf32>
    %55 = tpu.concatenate %51, %52, %53, %54 in 0 : vector<1x2x8x8xf32>, vector<1x2x8x8xf32>, vector<1x2x8x8xf32>, vector<1x2x8x8xf32> -> vector<4x2x8x8xf32>
    %56 = vector.shape_cast %55 : vector<4x2x8x8xf32> to vector<8x8x8xf32>
    %57 = arith.truncf %26 : vector<8x8x8xf32> to vector<8x8x8xbf16>
    %58 = arith.truncf %41 : vector<8x8x8xf32> to vector<8x8x8xbf16>
    "tpu.trace_start"() <{level = 10 : i32, message = "bqd,bkd->bqk"}> : () -> ()
    %cst_8 = arith.constant dense<0.000000e+00> : vector<8x8x8xf32>
    %59 = tpu.matmul %57, %58, %cst_8 {dimension_numbers = #tpu.dot_dimension_numbers<[2], [2], [1], [1], [0, 0, 0, 1, 1, 1], [0], [0]>} : vector<8x8x8xbf16>, vector<8x8x8xbf16>, vector<8x8x8xf32> -> vector<8x8x8xf32>
    "tpu.trace_stop"() : () -> ()
    %cst_9 = arith.constant 0.353553385 : f32
    %60 = vector.broadcast %cst_9 : f32 to vector<8x8x8xf32>
    %61 = arith.mulf %59, %60 : vector<8x8x8xf32>
    %cst_10 = arith.constant dense<0xFF800000> : vector<8x8xf32>
    %62 = vector.multi_reduction <maximumf>, %61, %cst_10 [2] : vector<8x8x8xf32> to vector<8x8xf32>
    %63 = vector.shape_cast %62 : vector<8x8xf32> to vector<8x8x1xf32>
    %64 = vector.broadcast %63 : vector<8x8x1xf32> to vector<8x8x8xf32>
    %65 = arith.subf %61, %64 : vector<8x8x8xf32>
    %66 = math.exp %65 : vector<8x8x8xf32>
    %cst_11 = arith.constant dense<0.000000e+00> : vector<8x8xf32>
    %67 = vector.multi_reduction <add>, %66, %cst_11 [2] : vector<8x8x8xf32> to vector<8x8xf32>
    %68 = vector.shape_cast %67 : vector<8x8xf32> to vector<8x8x1xf32>
    %69 = vector.broadcast %68 : vector<8x8x1xf32> to vector<8x8x8xf32>
    %70 = arith.divf %66, %69 : vector<8x8x8xf32>
    %71 = arith.truncf %70 : vector<8x8x8xf32> to vector<8x8x8xbf16>
    %72 = arith.truncf %56 : vector<8x8x8xf32> to vector<8x8x8xbf16>
    "tpu.trace_start"() <{level = 10 : i32, message = "bqk,bkd->bqd"}> : () -> ()
    %cst_12 = arith.constant dense<0.000000e+00> : vector<8x8x8xf32>
    %73 = tpu.matmul %71, %72, %cst_12 {dimension_numbers = #tpu.dot_dimension_numbers<[2], [1], [1], [2], [0, 0, 0, 1, 1, 2], [0], [0]>} : vector<8x8x8xbf16>, vector<8x8x8xbf16>, vector<8x8x8xf32> -> vector<8x8x8xf32>
    "tpu.trace_stop"() : () -> ()
    %74 = vector.shape_cast %73 : vector<8x8x8xf32> to vector<4x2x8x8xf32>
    %75 = vector.extract_strided_slice %74 {offsets = [0, 0, 0, 0], sizes = [1, 2, 8, 8], strides = [1, 1, 1, 1]} : vector<4x2x8x8xf32> to vector<1x2x8x8xf32>
    %76 = vector.shape_cast %75 : vector<1x2x8x8xf32> to vector<2x8x8xf32>
    %77 = vector.shape_cast %76 : vector<2x8x8xf32> to vector<16x8xf32>
    %78 = vector.extract_strided_slice %74 {offsets = [1, 0, 0, 0], sizes = [1, 2, 8, 8], strides = [1, 1, 1, 1]} : vector<4x2x8x8xf32> to vector<1x2x8x8xf32>
    %79 = vector.shape_cast %78 : vector<1x2x8x8xf32> to vector<2x8x8xf32>
    %80 = vector.shape_cast %79 : vector<2x8x8xf32> to vector<16x8xf32>
    %81 = vector.extract_strided_slice %74 {offsets = [2, 0, 0, 0], sizes = [1, 2, 8, 8], strides = [1, 1, 1, 1]} : vector<4x2x8x8xf32> to vector<1x2x8x8xf32>
    %82 = vector.shape_cast %81 : vector<1x2x8x8xf32> to vector<2x8x8xf32>
    %83 = vector.shape_cast %82 : vector<2x8x8xf32> to vector<16x8xf32>
    %84 = vector.extract_strided_slice %74 {offsets = [3, 0, 0, 0], sizes = [1, 2, 8, 8], strides = [1, 1, 1, 1]} : vector<4x2x8x8xf32> to vector<1x2x8x8xf32>
    %85 = vector.shape_cast %84 : vector<1x2x8x8xf32> to vector<2x8x8xf32>
    %86 = vector.shape_cast %85 : vector<2x8x8xf32> to vector<16x8xf32>
    %87 = tpu.concatenate %77, %80, %83, %86 in 1 : vector<16x8xf32>, vector<16x8xf32>, vector<16x8xf32>, vector<16x8xf32> -> vector<16x32xf32>
    %88 = arith.truncf %87 : vector<16x32xf32> to vector<16x32xbf16>
    %c0_13 = arith.constant 0 : index
    %c0_14 = arith.constant 0 : index
    %c0_15 = arith.constant 0 : index
    %89 = vector.load %arg4[%c0_13, %c0_14, %c0_15] : memref<1x32x32xbf16, #tpu.memory_space<vmem>>, vector<1x32x32xbf16>
    %90 = vector.shape_cast %89 : vector<1x32x32xbf16> to vector<32x32xbf16>
    %cst_16 = arith.constant dense<0.000000e+00> : vector<16x32xf32>
    %91 = tpu.matmul %88, %90, %cst_16 {dimension_numbers = #tpu.dot_dimension_numbers<[1], [0], [0], [1], [0, 0, 1, 1], [], []>} : vector<16x32xbf16>, vector<32x32xbf16>, vector<16x32xf32> -> vector<16x32xf32>
    %c0_17 = arith.constant 0 : index
    %c0_18 = arith.constant 0 : index
    %c0_19 = arith.constant 0 : index
    %92 = vector.load %arg5[%c0_17, %c0_18, %c0_19] : memref<1x1x32xf32, #tpu.memory_space<vmem>>, vector<1x1x32xf32>
    %93 = vector.shape_cast %92 : vector<1x1x32xf32> to vector<1x32xf32>
    %94 = vector.broadcast %93 : vector<1x32xf32> to vector<16x32xf32>
    %95 = arith.addf %91, %94 : vector<16x32xf32>
    %96 = arith.addf %3, %95 : vector<16x32xf32>
    %c0_20 = arith.constant 0 : index
    %c0_21 = arith.constant 0 : index
    %c0_22 = arith.constant 0 : index
    %97 = vector.load %arg6[%c0_20, %c0_21, %c0_22] : memref<1x1x32xf32, #tpu.memory_space<vmem>>, vector<1x1x32xf32>
    %98 = vector.shape_cast %97 : vector<1x1x32xf32> to vector<1x32xf32>
    %c0_23 = arith.constant 0 : index
    %c0_24 = arith.constant 0 : index
    %c0_25 = arith.constant 0 : index
    %99 = vector.load %arg7[%c0_23, %c0_24, %c0_25] : memref<1x1x32xf32, #tpu.memory_space<vmem>>, vector<1x1x32xf32>
    %100 = vector.shape_cast %99 : vector<1x1x32xf32> to vector<1x32xf32>
    %cst_26 = arith.constant dense<0.000000e+00> : vector<16xf32>
    %101 = vector.multi_reduction <add>, %96, %cst_26 [1] : vector<16x32xf32> to vector<16xf32>
    %102 = vector.shape_cast %101 : vector<16xf32> to vector<16x1xf32>
    %cst_27 = arith.constant 3.200000e+01 : f32
    %103 = vector.broadcast %cst_27 : f32 to vector<16x1xf32>
    %104 = arith.divf %102, %103 : vector<16x1xf32>
    %105 = vector.broadcast %104 : vector<16x1xf32> to vector<16x32xf32>
    %106 = arith.subf %96, %105 : vector<16x32xf32>
    %107 = arith.mulf %106, %106 : vector<16x32xf32>
    %cst_28 = arith.constant dense<0.000000e+00> : vector<16xf32>
    %108 = vector.multi_reduction <add>, %107, %cst_28 [1] : vector<16x32xf32> to vector<16xf32>
    %109 = vector.shape_cast %108 : vector<16xf32> to vector<16x1xf32>
    %cst_29 = arith.constant 3.200000e+01 : f32
    %110 = vector.broadcast %cst_29 : f32 to vector<16x1xf32>
    %111 = arith.divf %109, %110 : vector<16x1xf32>
    %112 = vector.broadcast %104 : vector<16x1xf32> to vector<16x32xf32>
    %113 = arith.subf %96, %112 : vector<16x32xf32>
    %cst_30 = arith.constant 9.99999974E-6 : f32
    %114 = vector.broadcast %cst_30 : f32 to vector<16x1xf32>
    %115 = arith.addf %111, %114 : vector<16x1xf32>
    %116 = math.rsqrt %115 : vector<16x1xf32>
    %117 = vector.broadcast %116 : vector<16x1xf32> to vector<16x32xf32>
    %118 = arith.mulf %113, %117 : vector<16x32xf32>
    %119 = vector.broadcast %98 : vector<1x32xf32> to vector<16x32xf32>
    %120 = arith.mulf %118, %119 : vector<16x32xf32>
    %121 = vector.broadcast %100 : vector<1x32xf32> to vector<16x32xf32>
    %122 = arith.addf %120, %121 : vector<16x32xf32>
    %123 = arith.truncf %122 : vector<16x32xf32> to vector<16x32xbf16>
    %c0_31 = arith.constant 0 : index
    %c0_32 = arith.constant 0 : index
    %c0_33 = arith.constant 0 : index
    %124 = vector.load %arg8[%c0_31, %c0_32, %c0_33] : memref<1x32x128xbf16, #tpu.memory_space<vmem>>, vector<1x32x128xbf16>
    %125 = vector.shape_cast %124 : vector<1x32x128xbf16> to vector<32x128xbf16>
    %cst_34 = arith.constant dense<0.000000e+00> : vector<16x128xf32>
    %126 = tpu.matmul %123, %125, %cst_34 {dimension_numbers = #tpu.dot_dimension_numbers<[1], [0], [0], [1], [0, 0, 1, 1], [], []>} : vector<16x32xbf16>, vector<32x128xbf16>, vector<16x128xf32> -> vector<16x128xf32>
    %c0_35 = arith.constant 0 : index
    %c0_36 = arith.constant 0 : index
    %c0_37 = arith.constant 0 : index
    %127 = vector.load %arg9[%c0_35, %c0_36, %c0_37] : memref<1x1x128xf32, #tpu.memory_space<vmem>>, vector<1x1x128xf32>
    %128 = vector.shape_cast %127 : vector<1x1x128xf32> to vector<1x128xf32>
    %129 = vector.broadcast %128 : vector<1x128xf32> to vector<16x128xf32>
    %130 = arith.addf %126, %129 : vector<16x128xf32>
    %cst_38 = arith.constant 5.000000e-01 : f32
    %131 = vector.broadcast %cst_38 : f32 to vector<16x128xf32>
    %132 = arith.mulf %131, %130 : vector<16x128xf32>
    %cst_39 = arith.constant 0.707106769 : f32
    %133 = vector.broadcast %cst_39 : f32 to vector<16x128xf32>
    %134 = arith.mulf %130, %133 : vector<16x128xf32>
    %135 = math.erf %134 : vector<16x128xf32>
    %cst_40 = arith.constant 1.000000e+00 : f32
    %136 = vector.broadcast %cst_40 : f32 to vector<16x128xf32>
    %137 = arith.addf %136, %135 : vector<16x128xf32>
    %138 = arith.mulf %132, %137 : vector<16x128xf32>
    %139 = arith.truncf %138 : vector<16x128xf32> to vector<16x128xbf16>
    %c0_41 = arith.constant 0 : index
    %c0_42 = arith.constant 0 : index
    %c0_43 = arith.constant 0 : index
    %140 = vector.load %arg10[%c0_41, %c0_42, %c0_43] : memref<1x128x32xbf16, #tpu.memory_space<vmem>>, vector<1x128x32xbf16>
    %141 = vector.shape_cast %140 : vector<1x128x32xbf16> to vector<128x32xbf16>
    %cst_44 = arith.constant dense<0.000000e+00> : vector<16x32xf32>
    %142 = tpu.matmul %139, %141, %cst_44 {dimension_numbers = #tpu.dot_dimension_numbers<[1], [0], [0], [1], [0, 0, 1, 1], [], []>} : vector<16x128xbf16>, vector<128x32xbf16>, vector<16x32xf32> -> vector<16x32xf32>
    %c0_45 = arith.constant 0 : index
    %c0_46 = arith.constant 0 : index
    %c0_47 = arith.constant 0 : index
    %143 = vector.load %arg11[%c0_45, %c0_46, %c0_47] : memref<1x1x32xf32, #tpu.memory_space<vmem>>, vector<1x1x32xf32>
    %144 = vector.shape_cast %143 : vector<1x1x32xf32> to vector<1x32xf32>
    %145 = vector.broadcast %144 : vector<1x32xf32> to vector<16x32xf32>
    %146 = arith.addf %142, %145 : vector<16x32xf32>
    %147 = arith.addf %122, %146 : vector<16x32xf32>
    %c0_48 = arith.constant 0 : index
    %c0_49 = arith.constant 0 : index
    %c0_50 = arith.constant 0 : index
    %148 = vector.load %arg12[%c0_48, %c0_49, %c0_50] : memref<1x1x32xf32, #tpu.memory_space<vmem>>, vector<1x1x32xf32>
    %149 = vector.shape_cast %148 : vector<1x1x32xf32> to vector<1x32xf32>
    %c0_51 = arith.constant 0 : index
    %c0_52 = arith.constant 0 : index
    %c0_53 = arith.constant 0 : index
    %150 = vector.load %arg13[%c0_51, %c0_52, %c0_53] : memref<1x1x32xf32, #tpu.memory_space<vmem>>, vector<1x1x32xf32>
    %151 = vector.shape_cast %150 : vector<1x1x32xf32> to vector<1x32xf32>
    %cst_54 = arith.constant dense<0.000000e+00> : vector<16xf32>
    %152 = vector.multi_reduction <add>, %147, %cst_54 [1] : vector<16x32xf32> to vector<16xf32>
    %153 = vector.shape_cast %152 : vector<16xf32> to vector<16x1xf32>
    %cst_55 = arith.constant 3.200000e+01 : f32
    %154 = vector.broadcast %cst_55 : f32 to vector<16x1xf32>
    %155 = arith.divf %153, %154 : vector<16x1xf32>
    %156 = vector.broadcast %155 : vector<16x1xf32> to vector<16x32xf32>
    %157 = arith.subf %147, %156 : vector<16x32xf32>
    %158 = arith.mulf %157, %157 : vector<16x32xf32>
    %cst_56 = arith.constant dense<0.000000e+00> : vector<16xf32>
    %159 = vector.multi_reduction <add>, %158, %cst_56 [1] : vector<16x32xf32> to vector<16xf32>
    %160 = vector.shape_cast %159 : vector<16xf32> to vector<16x1xf32>
    %cst_57 = arith.constant 3.200000e+01 : f32
    %161 = vector.broadcast %cst_57 : f32 to vector<16x1xf32>
    %162 = arith.divf %160, %161 : vector<16x1xf32>
    %163 = vector.broadcast %155 : vector<16x1xf32> to vector<16x32xf32>
    %164 = arith.subf %147, %163 : vector<16x32xf32>
    %cst_58 = arith.constant 9.99999974E-6 : f32
    %165 = vector.broadcast %cst_58 : f32 to vector<16x1xf32>
    %166 = arith.addf %162, %165 : vector<16x1xf32>
    %167 = math.rsqrt %166 : vector<16x1xf32>
    %168 = vector.broadcast %167 : vector<16x1xf32> to vector<16x32xf32>
    %169 = arith.mulf %164, %168 : vector<16x32xf32>
    %170 = vector.broadcast %149 : vector<1x32xf32> to vector<16x32xf32>
    %171 = arith.mulf %169, %170 : vector<16x32xf32>
    %172 = vector.broadcast %151 : vector<1x32xf32> to vector<16x32xf32>
    %173 = arith.addf %171, %172 : vector<16x32xf32>
    %c0_59 = arith.constant 0 : index
    %c0_60 = arith.constant 0 : index
    %174 = vector.load %arg19[%c0_59, %c0_60] : memref<16x32xf32, #tpu.memory_space<vmem>>, vector<16x32xf32>
    tpu.vector_store %arg19[%c0_59, %c0_60], %173 {strides = array<i32>} : memref<16x32xf32, #tpu.memory_space<vmem>>, vector<16x32xf32>,
    %c1_i32 = arith.constant 1 : i32
    %175 = arith.cmpi eq, %arg0, %c1_i32 : i32
    %176 = arith.extui %175 : i1 to i32
    %c0_i32_61 = arith.constant 0 : i32
    %177 = arith.cmpi ne, %176, %c0_i32_61 : i32
    scf.if %177 {
      %c0_62 = arith.constant 0 : index
      %c0_63 = arith.constant 0 : index
      %178 = vector.load %arg14[%c0_62, %c0_63] : memref<1x32xf32, #tpu.memory_space<vmem>>, vector<1x32xf32>
      %c0_64 = arith.constant 0 : index
      %c0_65 = arith.constant 0 : index
      %179 = vector.load %arg15[%c0_64, %c0_65] : memref<1x32xf32, #tpu.memory_space<vmem>>, vector<1x32xf32>
      %cst_66 = arith.constant dense<0.000000e+00> : vector<16xf32>
      %180 = vector.multi_reduction <add>, %173, %cst_66 [1] : vector<16x32xf32> to vector<16xf32>
      %181 = vector.shape_cast %180 : vector<16xf32> to vector<16x1xf32>
      %cst_67 = arith.constant 3.200000e+01 : f32
      %182 = vector.broadcast %cst_67 : f32 to vector<16x1xf32>
      %183 = arith.divf %181, %182 : vector<16x1xf32>
      %184 = vector.broadcast %183 : vector<16x1xf32> to vector<16x32xf32>
      %185 = arith.subf %173, %184 : vector<16x32xf32>
      %186 = arith.mulf %185, %185 : vector<16x32xf32>
      %cst_68 = arith.constant dense<0.000000e+00> : vector<16xf32>
      %187 = vector.multi_reduction <add>, %186, %cst_68 [1] : vector<16x32xf32> to vector<16xf32>
      %188 = vector.shape_cast %187 : vector<16xf32> to vector<16x1xf32>
      %cst_69 = arith.constant 3.200000e+01 : f32
      %189 = vector.broadcast %cst_69 : f32 to vector<16x1xf32>
      %190 = arith.divf %188, %189 : vector<16x1xf32>
      %191 = vector.broadcast %183 : vector<16x1xf32> to vector<16x32xf32>
      %192 = arith.subf %173, %191 : vector<16x32xf32>
      %cst_70 = arith.constant 9.99999974E-6 : f32
      %193 = vector.broadcast %cst_70 : f32 to vector<16x1xf32>
      %194 = arith.addf %190, %193 : vector<16x1xf32>
      %195 = math.rsqrt %194 : vector<16x1xf32>
      %196 = vector.broadcast %195 : vector<16x1xf32> to vector<16x32xf32>
      %197 = arith.mulf %192, %196 : vector<16x32xf32>
      %198 = vector.broadcast %178 : vector<1x32xf32> to vector<16x32xf32>
      %199 = arith.mulf %197, %198 : vector<16x32xf32>
      %200 = vector.broadcast %179 : vector<1x32xf32> to vector<16x32xf32>
      %201 = arith.addf %199, %200 : vector<16x32xf32>
      %202 = arith.truncf %201 : vector<16x32xf32> to vector<16x32xbf16>
      %c0_71 = arith.constant 0 : index
      %c0_72 = arith.constant 0 : index
      %203 = vector.load %arg16[%c0_71, %c0_72] : memref<32x128xbf16, #tpu.memory_space<vmem>>, vector<32x128xbf16>
      %cst_73 = arith.constant dense<0.000000e+00> : vector<16x128xf32>
      %204 = tpu.matmul %202, %203, %cst_73 {dimension_numbers = #tpu.dot_dimension_numbers<[1], [0], [0], [1], [0, 0, 1, 1], [], []>} : vector<16x32xbf16>, vector<32x128xbf16>, vector<16x128xf32> -> vector<16x128xf32>
      %c0_74 = arith.constant 0 : index
      %c0_75 = arith.constant 0 : index
      %205 = vector.load %arg17[%c0_74, %c0_75] : memref<1x128xf32, #tpu.memory_space<vmem>>, vector<1x128xf32>
      %206 = vector.broadcast %205 : vector<1x128xf32> to vector<16x128xf32>
      %207 = arith.addf %204, %206 : vector<16x128xf32>
      %c0_76 = arith.constant 0 : index
      %c0_77 = arith.constant 0 : index
      %208 = vector.load %arg18[%c0_76, %c0_77] : memref<16x128xf32, #tpu.memory_space<vmem>>, vector<16x128xf32>
      tpu.vector_store %arg18[%c0_76, %c0_77], %207 {strides = array<i32>} : memref<16x128xf32, #tpu.memory_space<vmem>>, vector<16x128xf32>,
    } else {
    }
    return
  }
  func.func @transform_0(%arg0: i32) -> (i32, i32) {
    %c0_i32 = arith.constant 0 : i32
    %c0_i32_0 = arith.constant 0 : i32
    %c0_i32_1 = arith.constant 0 : i32
    return %c0_i32, %c0_i32_0 : i32, i32
  }
  func.func @transform_1(%arg0: i32) -> (i32, i32, i32) {
    %c0_i32 = arith.constant 0 : i32
    %c0_i32_0 = arith.constant 0 : i32
    %c0_i32_1 = arith.constant 0 : i32
    return %arg0, %c0_i32, %c0_i32_0 : i32, i32, i32
  }
  func.func @transform_2(%arg0: i32) -> (i32, i32, i32) {
    %c0_i32 = arith.constant 0 : i32
    %c0_i32_0 = arith.constant 0 : i32
    %c0_i32_1 = arith.constant 0 : i32
    return %arg0, %c0_i32, %c0_i32_0 : i32, i32, i32
  }
  func.func @transform_3(%arg0: i32) -> (i32, i32, i32) {
    %c0_i32 = arith.constant 0 : i32
    %c0_i32_0 = arith.constant 0 : i32
    %c0_i32_1 = arith.constant 0 : i32
    return %arg0, %c0_i32, %c0_i32_0 : i32, i32, i32
  }
  func.func @transform_4(%arg0: i32) -> (i32, i32, i32) {
    %c0_i32 = arith.constant 0 : i32
    %c0_i32_0 = arith.constant 0 : i32
    %c0_i32_1 = arith.constant 0 : i32
    return %arg0, %c0_i32, %c0_i32_0 : i32, i32, i32
  }
  func.func @transform_5(%arg0: i32) -> (i32, i32, i32) {
    %c0_i32 = arith.constant 0 : i32
    %c0_i32_0 = arith.constant 0 : i32
    %c0_i32_1 = arith.constant 0 : i32
    return %arg0, %c0_i32, %c0_i32_0 : i32, i32, i32
  }
  func.func @transform_6(%arg0: i32) -> (i32, i32, i32) {
    %c0_i32 = arith.constant 0 : i32
    %c0_i32_0 = arith.constant 0 : i32
    %c0_i32_1 = arith.constant 0 : i32
    return %arg0, %c0_i32, %c0_i32_0 : i32, i32, i32
  }
  func.func @transform_7(%arg0: i32) -> (i32, i32, i32) {
    %c0_i32 = arith.constant 0 : i32
    %c0_i32_0 = arith.constant 0 : i32
    %c0_i32_1 = arith.constant 0 : i32
    return %arg0, %c0_i32, %c0_i32_0 : i32, i32, i32
  }
  func.func @transform_8(%arg0: i32) -> (i32, i32, i32) {
    %c0_i32 = arith.constant 0 : i32
    %c0_i32_0 = arith.constant 0 : i32
    %c0_i32_1 = arith.constant 0 : i32
    return %arg0, %c0_i32, %c0_i32_0 : i32, i32, i32
  }
  func.func @transform_9(%arg0: i32) -> (i32, i32, i32) {
    %c0_i32 = arith.constant 0 : i32
    %c0_i32_0 = arith.constant 0 : i32
    %c0_i32_1 = arith.constant 0 : i32
    return %arg0, %c0_i32, %c0_i32_0 : i32, i32, i32
  }
  func.func @transform_10(%arg0: i32) -> (i32, i32, i32) {
    %c0_i32 = arith.constant 0 : i32
    %c0_i32_0 = arith.constant 0 : i32
    %c0_i32_1 = arith.constant 0 : i32
    return %arg0, %c0_i32, %c0_i32_0 : i32, i32, i32
  }
  func.func @transform_11(%arg0: i32) -> (i32, i32, i32) {
    %c0_i32 = arith.constant 0 : i32
    %c0_i32_0 = arith.constant 0 : i32
    %c0_i32_1 = arith.constant 0 : i32
    return %arg0, %c0_i32, %c0_i32_0 : i32, i32, i32
  }
  func.func @transform_12(%arg0: i32) -> (i32, i32, i32) {
    %c0_i32 = arith.constant 0 : i32
    %c0_i32_0 = arith.constant 0 : i32
    %c0_i32_1 = arith.constant 0 : i32
    return %arg0, %c0_i32, %c0_i32_0 : i32, i32, i32
  }
  func.func @transform_13(%arg0: i32) -> (i32, i32) {
    %c0_i32 = arith.constant 0 : i32
    %c0_i32_0 = arith.constant 0 : i32
    %c0_i32_1 = arith.constant 0 : i32
    return %c0_i32, %c0_i32_0 : i32, i32
  }
  func.func @transform_14(%arg0: i32) -> (i32, i32) {
    %c0_i32 = arith.constant 0 : i32
    %c0_i32_0 = arith.constant 0 : i32
    %c0_i32_1 = arith.constant 0 : i32
    return %c0_i32, %c0_i32_0 : i32, i32
  }
  func.func @transform_15(%arg0: i32) -> (i32, i32) {
    %c0_i32 = arith.constant 0 : i32
    %c0_i32_0 = arith.constant 0 : i32
    %c0_i32_1 = arith.constant 0 : i32
    return %c0_i32, %c0_i32_0 : i32, i32
  }
  func.func @transform_16(%arg0: i32) -> (i32, i32) {
    %c0_i32 = arith.constant 0 : i32
    %c0_i32_0 = arith.constant 0 : i32
    %c0_i32_1 = arith.constant 0 : i32
    return %c0_i32, %c0_i32_0 : i32, i32
  }
  func.func @transform_17(%arg0: i32) -> (i32, i32) {
    %c0_i32 = arith.constant 0 : i32
    %c0_i32_0 = arith.constant 0 : i32
    %c0_i32_1 = arith.constant 0 : i32
    return %c0_i32, %c0_i32_0 : i32, i32
  }
}

</mosaic_0001>

<bundles_post_ra>
// kernel: tpu_custom_call.1
= control target key start
LH: loop header
LB: loop body
LE: loop exit
PB: predicated region body
PF: predicated region fallthrough
CT: control target
= control target key end

     0   :  { %s3285_s0 = inlined_call_operand.vmem [shape: f32[16,32], index: 0, kind: input, shape index: {}]   ;;  %s3286_s1 = inlined_call_operand.vmem [shape: bf16[2,32,96], index: 1, kind: input, shape index: {}]   ;;  %s3287_s2 = inlined_call_operand.vmem [shape: f32[2,1,96], index: 2, kind: input, shape index: {}]   ;;  %s3288_s3 = inlined_call_operand.vmem [shape: bf16[2,32,32], index: 3, kind: input, shape index: {}]   ;;  %s3289_s4 = inlined_call_operand.vmem [shape: f32[2,1,32], index: 4, kind: input, shape index: {}]   ;;  %s3290_s5 = inlined_call_operand.vmem [shape: f32[2,1,32], index: 5, kind: input, shape index: {}]   ;;  %s3291_s6 = inlined_call_operand.vmem [shape: f32[2,1,32], index: 6, kind: input, shape index: {}]   ;;  %s3292_s7 = inlined_call_operand.vmem [shape: bf16[2,32,128], index: 7, kind: input, shape index: {}]   ;;  %s3293_s8 = inlined_call_operand.vmem [shape: f32[2,1,128], index: 8, kind: input, shape index: {}]   ;;  %s3294_s9 = inlined_call_operand.vmem [shape: bf16[2,128,32], index: 9, kind: input, shape index: {}]   ;;  %s3295_s10 = inlined_call_operand.vmem [shape: f32[2,1,32], index: 10, kind: input, shape index: {}]   ;;  %s3296_s11 = inlined_call_operand.vmem [shape: f32[2,1,32], index: 11, kind: input, shape index: {}]   ;;  %s3297_s12 = inlined_call_operand.vmem [shape: f32[2,1,32], index: 12, kind: input, shape index: {}]   ;;  %s3298_s13 = inlined_call_operand.vmem [shape: f32[1,32], index: 13, kind: input, shape index: {}]   ;;  %s3299_s14 = inlined_call_operand.vmem [shape: f32[1,32], index: 14, kind: input, shape index: {}]   ;;  %s3300_s15 = inlined_call_operand.vmem [shape: bf16[32,128], index: 15, kind: input, shape index: {}]   ;;  %s3301_s16 = inlined_call_operand.vmem [shape: f32[1,128], index: 16, kind: input, shape index: {}]   ;;  %s3302_s17 = inlined_call_operand.hbm [shape: f32[16,128], index: 17, kind: output, shape index: {}]  }
   0x1   :  { %3307 = sst [smem:[#allocation7_spill]] %s3285_s0 }
   0x2   :  { %3308 = sst [smem:[#allocation8_spill]] %s3286_s1 }
   0x3   :  { %3309 = sst [smem:[#allocation9_spill]] %s3288_s3 }
   0x4   :  { %3310 = sst [smem:[#allocation10_spill]] %s3298_s13 }
   0x5   :  { %3311 = sst [smem:[#allocation11_spill]] %s3299_s14 }
   0x6   :  { %3312 = sst [smem:[#allocation12_spill]] %s3300_s15 }
   0x7   :  { %3313 = sst [smem:[#allocation13_spill]] %s3301_s16 }
   0x8   :  { %3314 = sst [smem:[#allocation14_spill]] %s3302_s17 }
   0x9   :  { %22 = vsyncpa [#allocation4], 0  ;;  %s2892_s24 = smov 0  }
   0xa LB: > { %3315 = sst [smem:[#allocation6_spill]] %s2786_s24  ;;  %s2898_s25 = sadd.s32 4294967295, %s2786_s24   ;;  %s2786_s24 = sphi %s2892_s24, %s28_s24  }
   0xb   : > { %p2361_p0 = scmp.ge.s32.totalorder %s2786_s24, 1  ;;  %p577_p1 = scmp.lt.s32.totalorder %s2786_s24, 3 }
   0xd   : > { %p578_p2 = pnand %p2361_p0, %p577_p1 }
   0xe   : > { %p663_p3 = scmp.lt.s32.totalorder (!%p578_p2), %s2898_s25, 1  ;;  %s3316_s19 = sld [smem:[#allocation8_spill]] (!%p578_p2) }
   0xf   : > { %581 = sbr.rel (%p578_p2) target bundleno = 3294 (0xcde), region = 88  ;;  %s3317_s3 = sld [smem:[#allocation9_spill]] (!%p578_p2) }
  0x10   : > { %p2370_p4 = scmp.ne.s32.totalorder (!%p578_p2), %s2898_s25, 0 }
  0x16   : > { %s2904_s26 = scalar_select %p663_p3, %s2898_s25, 1 }
  0x17   : > { %711 = sbr.rel (%p2370_p4) target bundleno = 32 (0x20), region = 92  ;;  %s3318_s24 = sld [smem:[#allocation7_spill]] (!%p2370_p4)  ;;  %vm714_vm0 = vcmask (!%p2370_p4), 261120  }
  0x18   : > { %s2423_s27 = sshll.u32 %s2904_s26, 4  ;;  %s700_s15 = scalar_lea.vmem %s3295_s10, %s2904_s26 }
  0x19   : > { %s667_s1 = scalar_lea.vmem %s3316_s19, %s2423_s27  ;;  %s2917_s22 = scalar_lea.vmem %s3317_s3, %s2423_s27 }
  0x1a   : > { %s2934_s18 = scalar_lea.vmem %s3292_s7, %s2423_s27  ;;  %s2426_s3 = sshll.u32 %s2904_s26, 6 }
  0x1b   : > { %s2944_s17 = scalar_lea.vmem %s3294_s9, %s2426_s3  ;;  %s703_s0 = scalar_lea.vmem %s3296_s11, %s2904_s26 }
  0x1c   : > { %s706_s13 = scalar_lea.vmem %s3297_s12, %s2904_s26 }
  0x1d   : > { %s3319_s23 = smov (!%p2370_p4), %s3318_s24  ;;  %v712_v0 = vld [vmem:[%s3318_s24] sm:$0xff] (!%p2370_p4) }
  0x1e   : > { %v713_v1 = vld [vmem:[%s3319_s23 + $0x8] sm:$0xff]  ;;  %715 = vst.msk [vmem:[#allocation2] sm:$0xff] %vm714_vm0, %v712_v0 }
  0x1f   : > { %716 = vst.msk [vmem:[#allocation2 + $0x8] sm:$0xff] %vm714_vm0, %v713_v1 }
  0x20 PF: > { %v2686_v2 = vld [vmem:[%s667_s1] sm:$0xff]   ;;  %v2788_v3 = vmov 0.0   ;;  %v2687_v4 = vld [vmem:[%s667_s1 + $0x8] sm:$0xff]   ;;  %vm2789_vm1 = vmmov 0   ;;  %vm743_vm2 = vcmask 261120   ;;  %s3320_s21 = scalar_lea.vmem %s3287_s2, %s2904_s26  ;;  %s2790_s14 = smov 104  }
  0x21   : > { %2480 = vmatprep.subr.bf16.mxu0 %v2788_v3  ;;  %2500 = vmatprep.subr.bf16.mxu1 %v2788_v3  ;;  %v2371_v8 = vld [vmem:[%s3320_s21] ss:$0 sm:$0xff]  ;;  %s2791_s16 = smov 120   ;;  %s2792_s28 = smov 96   ;;  %vm819_vm3 = vcmask 64512   ;;  %vm1318_vm4 = vcmask 1043456  }
  0x22   : > { %2481 = vmatpush3.bf16.msra.mxu0 %v2686_v2  ;;  %2484 = vmatprep.mubr.msk.bf16.mxu0 %vm2789_vm1, %v2788_v3  ;;  %s2793_s27 = smov 112   ;;  %s2794_s30 = smov 64   ;;  %vm1724_vm5 = vcmask 130048   ;;  %vm1727_vm6 = vcmask 195584  }
  0x23   : > { %2482 = vmatprep.subr.bf16.mxu0 %v2788_v3  ;;  %2502 = vmatprep.mubr.msk.bf16.mxu1 %vm2789_vm1, %v2788_v3  ;;  %s2795_s19 = smov 8   ;;  %s2796_s20 = smov 16  }
  0x24   : > { %s2797_s24 = smov 24   ;;  %s3321_s1 = scalar_lea.vmem %s3289_s4, %s2904_s26 }
  0x25   : > { %s3322_s21 = scalar_lea.vmem %s3290_s5, %s2904_s26  ;;  %p2412_p5 = scmp.ne.s32.totalorder %s2898_s25, 1 }
  0x26   : > { %v2971_v6 = vld [vmem:[#allocation2 + $0x8] sm:$0xff]  ;;  %2483 = vmatpush3.bf16.msra.mxu0 %v2687_v4  ;;  %vm2799_vm7 = vmmov (!%p2412_p5), 0  }
  0x27   : > { %v2969_v5 = vld [vmem:[#allocation2] sm:$0xff]  ;;  %2488 = vmatprep.subr.bf16.mxu0 %v2788_v3 }
  0x28   : > { %v719_v7 = vpack.c.bf16 %v2971_v6, %v2969_v5 }
  0x2a   : > { %2485 = vmatmul.mubr.msk.bf16.vlgmr.msra.gmra.mrb[0].mxu0 %vm743_vm2, %v719_v7 }
  0x2b   : > { %2490 = vmatprep.mubr.msk.bf16.mxu0 %vm2789_vm1, %v2788_v3 }
  0xfd   : > { %v781_v9 = vpop.f32.mrb[0].mxu0 }
  0xfe   : > { %v2486_v10 = vpop.f32.mrb[1].mxu0  ;;  %v782_v12 = vadd.f32 %v2371_v8, %v781_v9 }
  0xff   : > { %v784_v11 = vpop.f32.mrb[2].mxu0 }
 0x100   : > { %v785_v13 = vadd.f32 %v2371_v8, %v784_v11  ;;  %v2487_v14 = vpop.f32.mrb[3].mxu0  ;;  %v808_v16 = vpack.c.bf16 %v782_v12, %v782_v12 }
 0x102   : > { %v2666_v15 = vpack.i.bf16 %v785_v13, %v782_v12  ;;  %v809_v17 = vpack.c.bf16 %v785_v13, %v785_v13 }
 0x104   : > { %2667 = vrot.lane.b32.xlu1 %v2666_v15, %s2790_s14  ;;  %2657 = vrot.lane.b32.xlu0 %v2666_v15, %s2791_s16  ;;  %s3326_s16 = sld [smem:[#allocation10_spill]] (!%p2412_p5) }
 0x108   : > { %817 = vrot.lane.b32.xlu1 %v808_v16, %s2792_s28  ;;  %2662 = vrot.lane.b32.xlu0 %v2666_v15, %s2793_s27 }
 0x10c   : > { %867 = vrot.lane.b32.xlu0 %v809_v17, %s2792_s28 }
 0x176   : > { %v2668_v18 = vpop.permute.xlu1 %2667  ;;  %v2658_v19 = vpop.permute.xlu0 %2657 }
 0x177   : > { %v2660_v20 = vunpack.i.h.bf16 %v2658_v19  ;;  %v2659_v21 = vunpack.i.l.bf16 %v2658_v19  ;;  %v2669_v29 = vunpack.i.l.bf16 %v2668_v18  ;;  %v2670_v32 = vunpack.i.h.bf16 %v2668_v18 }
 0x179   : > { %v2989_v22 = vpack.c.bf16 %v2660_v20, %v2660_v20  ;;  %v2991_v23 = vpack.c.bf16 %v2659_v21, %v2659_v21  ;;  %v3007_v34 = vpack.c.bf16 %v2669_v29, %v2669_v29  ;;  %v3009_v35 = vpack.c.bf16 %v2670_v32, %v2670_v32 }
 0x17a   : > { %v818_v24 = vpop.permute.xlu1 %817  ;;  %v2663_v25 = vpop.permute.xlu0 %2662 }
 0x17b   : > { %v824_v26 = vsel %vm819_vm3, %v818_v24, 0  ;;  %v2665_v27 = vunpack.i.h.bf16 %v2663_v25  ;;  %v2664_v28 = vunpack.i.l.bf16 %v2663_v25  ;;  %916 = vrot.lane.b32.xlu1 %v2991_v23, %s2792_s28  ;;  %965 = vrot.lane.b32.xlu0 %v2989_v22, %s2792_s28 }
 0x17c   : > { %2489 = vmatpush3.bf16.xpose.msra.mxu0 %v824_v26 }
 0x17d   : > { %v2998_v30 = vpack.c.bf16 %v2665_v27, %v2665_v27  ;;  %v3000_v31 = vpack.c.bf16 %v2664_v28, %v2664_v28  ;;  %2494 = vmatprep.subr.bf16.mxu0 %v2788_v3 }
 0x17e   : > { %v868_v33 = vpop.permute.xlu0 %867 }
 0x17f   : > { %1014 = vrot.lane.b32.xlu1 %v3000_v31, %s2792_s28  ;;  %1063 = vrot.lane.b32.xlu0 %v2998_v30, %s2792_s28  ;;  %v873_v36 = vsel %vm819_vm3, %v868_v33, 0 }
 0x183   : > { %2491 = vmatmul.mubr.msk.bf16.vlgmr.msra.gmra.mrb[4].mxu0 %vm819_vm3, %v808_v16  ;;  %1112 = vrot.lane.b32.xlu1 %v3007_v34, %s2792_s28 }
 0x184   : > { %1161 = vrot.lane.b32.xlu0 %v3009_v35, %s2792_s28  ;;  %2495 = vmatpush3.bf16.xpose.msra.mxu0 %v873_v36  ;;  %s3323_s28 = scalar_lea.vmem %s3291_s6, %s2904_s26 }
 0x185   : > { %2496 = vmatprep.mubr.msk.bf16.mxu0 %vm2789_vm1, %v2788_v3  ;;  %2506 = vmatprep.subr.bf16.mxu0 %v2788_v3 }
 0x187   : > { %1362 = vrot.lane.b32.xlu1 %v809_v17, %s2794_s30 }
 0x188   : > { %1313 = vrot.lane.b32.xlu0 %v808_v16, %s2794_s30 }
 0x18b   : > { %2497 = vmatmul.mubr.msk.bf16.vlgmr.msra.gmra.mrb[8].mxu0 %vm819_vm3, %v809_v17 }
 0x18c   : > { %2508 = vmatprep.mubr.msk.bf16.mxu0 %vm2789_vm1, %v2788_v3 }
 0x1ed   : > { %v917_v37 = vpop.permute.xlu1 %916  ;;  %v966_v38 = vpop.permute.xlu0 %965 }
 0x1ee   : > { %v971_v39 = vsel %vm819_vm3, %v966_v38, 0  ;;  %v922_v40 = vsel %vm819_vm3, %v917_v37, 0 }
 0x1ef   : > { %2501 = vmatpush3.bf16.xpose.msra.mxu1 %v922_v40  ;;  %2507 = vmatpush3.bf16.xpose.msra.mxu0 %v971_v39 }
 0x1f0   : > { %2512 = vmatprep.subr.bf16.mxu1 %v2788_v3  ;;  %2518 = vmatprep.subr.bf16.mxu0 %v2788_v3 }
 0x1f1   : > { %v1015_v41 = vpop.permute.xlu1 %1014  ;;  %v1064_v42 = vpop.permute.xlu0 %1063 }
 0x1f2   : > { %v1020_v43 = vsel %vm819_vm3, %v1015_v41, 0  ;;  %v1069_v44 = vsel %vm819_vm3, %v1064_v42, 0 }
 0x1f5   : > { %v1113_v45 = vpop.permute.xlu1 %1112 }
 0x1f6   : > { %2503 = vmatmul.mubr.msk.bf16.vlgmr.msra.gmra.mrb[0].mxu1 %vm819_vm3, %v2991_v23  ;;  %2509 = vmatmul.mubr.msk.bf16.vlgmr.msra.gmra.mrb[12].mxu0 %vm819_vm3, %v2989_v22  ;;  %v1162_v46 = vpop.permute.xlu0 %1161  ;;  %v1118_v47 = vsel %vm819_vm3, %v1113_v45, 0 }
 0x1f7   : > { %2513 = vmatpush3.bf16.xpose.msra.mxu1 %v1020_v43  ;;  %2519 = vmatpush3.bf16.xpose.msra.mxu0 %v1069_v44  ;;  %v1167_v48 = vsel %vm819_vm3, %v1162_v46, 0 }
 0x1f8   : > { %2514 = vmatprep.mubr.msk.bf16.mxu1 %vm2789_vm1, %v2788_v3  ;;  %2520 = vmatprep.mubr.msk.bf16.mxu0 %vm2789_vm1, %v2788_v3 }
 0x1f9   : > { %2524 = vmatprep.subr.bf16.mxu1 %v2788_v3  ;;  %2530 = vmatprep.subr.bf16.mxu0 %v2788_v3  ;;  %v1363_v49 = vpop.permute.xlu1 %1362 }
 0x1fa   : > { %v1314_v50 = vpop.permute.xlu0 %1313  ;;  %v1368_v51 = vsel %vm1318_vm4, %v1363_v49, 0 }
 0x1fb   : > { %v1320_v52 = vsel %vm1318_vm4, %v1314_v50, 0 }
 0x1fe   : > { %2515 = vmatmul.mubr.msk.bf16.vlgmr.msra.gmra.mrb[4].mxu1 %vm819_vm3, %v3000_v31  ;;  %2521 = vmatmul.mubr.msk.bf16.vlgmr.msra.gmra.mrb[16].mxu0 %vm819_vm3, %v2998_v30 }
 0x1ff   : > { %2525 = vmatpush3.bf16.xpose.msra.mxu1 %v1118_v47  ;;  %2531 = vmatpush3.bf16.xpose.msra.mxu0 %v1167_v48 }
 0x200   : > { %2526 = vmatprep.mubr.msk.bf16.mxu1 %vm2789_vm1, %v2788_v3  ;;  %2532 = vmatprep.mubr.msk.bf16.mxu0 %vm2789_vm1, %v2788_v3 }
 0x201   : > { %2536 = vmatprep.subr.bf16.mxu1 %v2788_v3  ;;  %2542 = vmatprep.subr.bf16.mxu0 %v2788_v3 }
 0x206   : > { %2527 = vmatmul.mubr.msk.bf16.vlgmr.msra.gmra.mrb[8].mxu1 %vm819_vm3, %v3007_v34  ;;  %2533 = vmatmul.mubr.msk.bf16.vlgmr.msra.gmra.mrb[20].mxu0 %vm819_vm3, %v3009_v35 }
 0x207   : > { %2537 = vmatpush3.bf16.msra.mxu1 %v1320_v52  ;;  %2543 = vmatpush3.bf16.msra.mxu0 %v1368_v51 }
 0x208   : > { %2538 = vmatprep.mubr.msk.bf16.mxu1 %vm2789_vm1, %v2788_v3  ;;  %2544 = vmatprep.mubr.msk.bf16.mxu0 %vm2789_vm1, %v2788_v3 }
 0x209   : > { %2548 = vmatprep.subr.bf16.mxu1 %v2788_v3  ;;  %2554 = vmatprep.subr.bf16.mxu0 %v2788_v3 }
 0x256   : > { %v860_v53 = vpop.f32.mrb[4].mxu0 }
 0x257   : > { %v1209_v54 = vmul.f32 0.35355338, %v860_v53  ;;  %v2492_v55 = vpop.f32.mrb[5].mxu0 }
 0x258   : > { %v863_v56 = vpop.f32.mrb[6].mxu0 }
 0x259   : > { %v2493_v57 = vpop.f32.mrb[7].mxu0  ;;  %v1217_v58 = vsel %vm819_vm3, %v1209_v54, -inf }
 0x25a   : > { %1218 = vmax.xlane.f32.xlu1 %v1217_v58 }
 0x25e   : > { %v909_v59 = vpop.f32.mrb[8].mxu0 }
 0x25f   : > { %v1210_v60 = vmul.f32 0.35355338, %v909_v59  ;;  %v2498_v61 = vpop.f32.mrb[9].mxu0 }
 0x260   : > { %v912_v62 = vpop.f32.mrb[10].mxu0 }
 0x261   : > { %v2499_v63 = vpop.f32.mrb[11].mxu0  ;;  %v1220_v0 = vsel %vm819_vm3, %v1210_v60, -inf }
 0x262   : > { %1221 = vmax.xlane.f32.xlu0 %v1220_v0 }
 0x2c9   : > { %v958_v1 = vpop.f32.mrb[0].mxu1  ;;  %v1007_v2 = vpop.f32.mrb[12].mxu0 }
 0x2ca   : > { %v1211_v4 = vmul.f32 0.35355338, %v958_v1  ;;  %v1212_v7 = vmul.f32 0.35355338, %v1007_v2  ;;  %v2504_v8 = vpop.f32.mrb[1].mxu1  ;;  %v2510_v9 = vpop.f32.mrb[13].mxu0 }
 0x2cb   : > { %v961_v10 = vpop.f32.mrb[2].mxu1  ;;  %v1010_v11 = vpop.f32.mrb[14].mxu0 }
 0x2cc   : > { %v2505_v12 = vpop.f32.mrb[3].mxu1  ;;  %v2511_v13 = vpop.f32.mrb[15].mxu0  ;;  %v1223_v14 = vsel %vm819_vm3, %v1211_v4, -inf  ;;  %v1226_v15 = vsel %vm819_vm3, %v1212_v7, -inf }
 0x2cd   : > { %1224 = vmax.xlane.f32.xlu0 %v1223_v14  ;;  %1227 = vmax.xlane.f32.xlu1 %v1226_v15 }
 0x2d1   : > { %v1056_v16 = vpop.f32.mrb[4].mxu1  ;;  %v1105_v17 = vpop.f32.mrb[16].mxu0 }
 0x2d2   : > { %v3069_v18 = vmul.f32 0.35355338, %v1056_v16  ;;  %v1214_v19 = vmul.f32 0.35355338, %v1105_v17  ;;  %v2516_v20 = vpop.f32.mrb[5].mxu1  ;;  %v2522_v21 = vpop.f32.mrb[17].mxu0 }
 0x2d3   : > { %v1059_v24 = vpop.f32.mrb[6].mxu1  ;;  %v1108_v25 = vpop.f32.mrb[18].mxu0 }
 0x2d4   : > { %v2517_v26 = vpop.f32.mrb[7].mxu1  ;;  %v2523_v27 = vpop.f32.mrb[19].mxu0  ;;  %v1229_v28 = vsel %vm819_vm3, %v3069_v18, -inf  ;;  %v1232_v29 = vsel %vm819_vm3, %v1214_v19, -inf }
 0x2d5   : > { %1230 = vmax.xlane.f32.xlu0 %v1229_v28  ;;  %1233 = vmax.xlane.f32.xlu1 %v1232_v29 }
 0x2d9   : > { %v1154_v32 = vpop.f32.mrb[8].mxu1  ;;  %v1203_v33 = vpop.f32.mrb[20].mxu0 }
 0x2da   : > { %v3074_v36 = vmul.f32 0.35355338, %v1154_v32  ;;  %v1216_v37 = vmul.f32 0.35355338, %v1203_v33  ;;  %v2528_v38 = vpop.f32.mrb[9].mxu1  ;;  %v2534_v39 = vpop.f32.mrb[21].mxu0 }
 0x2db   : > { %v1157_v40 = vpop.f32.mrb[10].mxu1  ;;  %v1206_v41 = vpop.f32.mrb[22].mxu0 }
 0x2dc   : > { %v2529_v42 = vpop.f32.mrb[11].mxu1  ;;  %v2535_v43 = vpop.f32.mrb[23].mxu0  ;;  %v1235_v44 = vsel %vm819_vm3, %v3074_v36, -inf  ;;  %v1238_v45 = vsel %vm819_vm3, %v1216_v37, -inf }
 0x2dd   : > { %1236 = vmax.xlane.f32.xlu0 %v1235_v44  ;;  %1239 = vmax.xlane.f32.xlu1 %v1238_v45 }
 0x2e7   : > { %v1219_v46 = vpop.xlane.xlu1 %1218 }
 0x2e8   : > { %v1241_v48 = vsub.f32 %v1209_v54, %v1219_v46 }
 0x2ea   : > { %v1249_v50 = vmul.f32 1.442695, %v1241_v48 }
 0x2ec   : > { %2700 = vpow2.f32 %v1249_v50 }
 0x2ee   : > { %1410 = vrot.lane.b32.xlu1 %v2991_v23, %s2794_s30 }
 0x2ef   : > { %v1222_v47 = vpop.xlane.xlu0 %1221 }
 0x2f0   : > { %v1242_v49 = vsub.f32 %v1210_v60, %v1222_v47 }
 0x2f2   : > { %v1251_v51 = vmul.f32 1.442695, %v1242_v49 }
 0x2f3   : > { %1458 = vrot.lane.b32.xlu0 %v2989_v22, %s2794_s30 }
 0x2f4   : > { %2702 = vpow2.f32 %v1251_v51 }
 0x2f6   : > { %v2701_v52 = vpop.eup %2700 }
 0x2f7   : > { %v1265_v55 = vsel %vm819_vm3, %v2701_v52, 0.0 }
 0x2fe   : > { %v2703_v53 = vpop.eup %2702 }
 0x2ff   : > { %v1268_v56 = vsel %vm819_vm3, %v2703_v53, 0.0 }
 0x312   : > { %1266 = vadd.xlane.f32.xlu0 %v1265_v55  ;;  %1269 = vadd.xlane.f32.xlu1 %v1268_v56 }
 0x323   : > { %1506 = vrot.lane.b32.xlu1 %v3000_v31, %s2794_s30 }
 0x35a   : > { %v1225_v22 = vpop.xlane.xlu0 %1224  ;;  %v1228_v23 = vpop.xlane.xlu1 %1227 }
 0x35b   : > { %v1243_v57 = vsub.f32 %v1211_v4, %v1225_v22  ;;  %v1244_v54 = vsub.f32 %v1212_v7, %v1228_v23 }
 0x35d   : > { %v1253_v58 = vmul.f32 1.442695, %v1243_v57  ;;  %v1255_v59 = vmul.f32 1.442695, %v1244_v54 }
 0x35f   : > { %2704 = vpow2.f32 %v1253_v58 }
 0x360   : > { %2706 = vpow2.f32 %v1255_v59 }
 0x362   : > { %v1234_v60 = vpop.xlane.xlu1 %1233  ;;  %v1231_v12 = vpop.xlane.xlu0 %1230 }
 0x363   : > { %v1246_v61 = vsub.f32 %v1214_v19, %v1234_v60  ;;  %v1245_v13 = vsub.f32 %v3069_v18, %v1231_v12 }
 0x365   : > { %v1259_v62 = vmul.f32 1.442695, %v1246_v61  ;;  %v1257_v15 = vmul.f32 1.442695, %v1245_v13 }
 0x367   : > { %2708 = vpow2.f32 %v1259_v62 }
 0x369   : > { %v3087_v63 = vpop.eup %2704 }
 0x36a   : > { %v3089_v0 = vpop.eup %2706  ;;  %v1240_v1 = vpop.xlane.xlu1 %1239  ;;  %v1271_v31 = vsel %vm819_vm3, %v3087_v63, 0.0 }
 0x36b   : > { %v1248_v2 = vsub.f32 %v1216_v37, %v1240_v1  ;;  %1272 = vadd.xlane.f32.xlu0 %v1271_v31  ;;  %v1274_v4 = vsel %vm819_vm3, %v3089_v0, 0.0  ;;  %v1237_v14 = vpop.xlane.xlu0 %1236 }
 0x36c   : > { %1275 = vadd.xlane.f32.xlu1 %v1274_v4  ;;  %v1247_v16 = vsub.f32 %v3074_v36, %v1237_v14 }
 0x36d   : > { %v1263_v7 = vmul.f32 1.442695, %v1248_v2 }
 0x36e   : > { %v1261_v17 = vmul.f32 1.442695, %v1247_v16  ;;  %v1411_v20 = vpop.permute.xlu1 %1410 }
 0x36f   : > { %2710 = vpow2.f32 %v1263_v7  ;;  %v1459_v19 = vpop.permute.xlu0 %1458  ;;  %v1416_v36 = vsel %vm1318_vm4, %v1411_v20, 0 }
 0x370   : > { %2712 = vpow2.f32 %v1257_v15  ;;  %v1464_v37 = vsel %vm1318_vm4, %v1459_v19, 0 }
 0x371   : > { %v3095_v8 = vpop.eup %2708  ;;  %2714 = vpow2.f32 %v1261_v17 }
 0x372   : > { %v1280_v9 = vsel %vm819_vm3, %v3095_v8, 0.0 }
 0x373   : > { %1281 = vadd.xlane.f32.xlu1 %v1280_v9 }
 0x379   : > { %v3099_v10 = vpop.eup %2710 }
 0x37a   : > { %v1286_v11 = vsel %vm819_vm3, %v3099_v10, 0.0  ;;  %v3109_v21 = vpop.eup %2712 }
 0x37b   : > { %1287 = vadd.xlane.f32.xlu1 %v1286_v11  ;;  %v3113_v18 = vpop.eup %2714 }
 0x381   : > { %1554 = vrot.lane.b32.xlu0 %v2998_v30, %s2794_s30  ;;  %v1277_v30 = vsel %vm819_vm3, %v3109_v21, 0.0 }
 0x38c   : > { %1602 = vrot.lane.b32.xlu1 %v3007_v34, %s2794_s30  ;;  %v1283_v34 = vsel %vm819_vm3, %v3113_v18, 0.0 }
 0x39f   : > { %v1267_v24 = vpop.xlane.xlu0 %1266  ;;  %v1270_v25 = vpop.xlane.xlu1 %1269 }
 0x3a0   : > { %2716 = vrcp.f32 %v1267_v24  ;;  %1278 = vadd.xlane.f32.xlu0 %v1277_v30 }
 0x3a1   : > { %2718 = vrcp.f32 %v1270_v25 }
 0x3a3   : > { %v1507_v38 = vpop.permute.xlu1 %1506 }
 0x3a4   : > { %1284 = vadd.xlane.f32.xlu0 %v1283_v34  ;;  %v1512_v49 = vsel %vm1318_vm4, %v1507_v38, 0 }
 0x3aa   : > { %v2717_v26 = vpop.eup %2716 }
 0x3ab   : > { %v2719_v27 = vpop.eup %2718  ;;  %v1290_v28 = vmul.f32 %v2717_v26, %v2701_v52  ;;  %v2688_v26 = vld [vmem:[%s2917_s22] sm:$0xff]  }
 0x3ac   : > { %v1292_v29 = vmul.f32 %v2719_v27, %v2703_v53 }
 0x3ad   : > { %v1305_v32 = vpack.c.bf16 %v1290_v28, %v1290_v28 }
 0x3ae   : > { %v1306_v33 = vpack.c.bf16 %v1292_v29, %v1292_v29 }
 0x3af   : > { %2539 = vmatmul.mubr.msk.bf16.vlgmr.msra.gmra.mrb[12].mxu1 %vm819_vm3, %v1305_v32 }
 0x3b0   : > { %2545 = vmatmul.mubr.msk.bf16.vlgmr.msra.gmra.mrb[24].mxu0 %vm819_vm3, %v1306_v33  ;;  %2549 = vmatpush3.bf16.msra.mxu1 %v1416_v36  ;;  %v2689_v36 = vld [vmem:[%s2917_s22 + $0x8] sm:$0xff]  }
 0x3b1   : > { %2555 = vmatpush3.bf16.msra.mxu0 %v1464_v37  ;;  %2550 = vmatprep.mubr.msk.bf16.mxu1 %vm2789_vm1, %v2788_v3 }
 0x3b2   : > { %2556 = vmatprep.mubr.msk.bf16.mxu0 %vm2789_vm1, %v2788_v3  ;;  %2560 = vmatprep.subr.bf16.mxu1 %v2788_v3 }
 0x3b3   : > { %2566 = vmatprep.subr.bf16.mxu0 %v2788_v3 }
 0x3ba   : > { %1650 = vrot.lane.b32.xlu0 %v3009_v35, %s2794_s30  ;;  %s3327_s30 = sld [smem:[#allocation11_spill]] (!%p2412_p5) }
 0x3f8   : > { %v1273_v39 = vpop.xlane.xlu0 %1272 }
 0x3f9   : > { %2720 = vrcp.f32 %v1273_v39  ;;  %v1276_v40 = vpop.xlane.xlu1 %1275 }
 0x3fa   : > { %2722 = vrcp.f32 %v1276_v40 }
 0x3fc   : > { %v1555_v46 = vpop.permute.xlu0 %1554 }
 0x3fd   : > { %v1560_v35 = vsel %vm1318_vm4, %v1555_v46, 0 }
 0x400   : > { %v1282_v41 = vpop.xlane.xlu1 %1281 }
 0x401   : > { %2724 = vrcp.f32 %v1282_v41 }
 0x403   : > { %v2721_v42 = vpop.eup %2720 }
 0x404   : > { %v2723_v43 = vpop.eup %2722  ;;  %v1294_v44 = vmul.f32 %v2721_v42, %v3087_v63 }
 0x405   : > { %v1296_v45 = vmul.f32 %v2723_v43, %v3089_v0 }
 0x406   : > { %v1307_v47 = vpack.c.bf16 %v1294_v44, %v1294_v44 }
 0x407   : > { %v1308_v48 = vpack.c.bf16 %v1296_v45, %v1296_v45 }
 0x408   : > { %2551 = vmatmul.mubr.msk.bf16.vlgmr.msra.gmra.mrb[16].mxu1 %vm819_vm3, %v1307_v47  ;;  %v1288_v53 = vpop.xlane.xlu1 %1287 }
 0x409   : > { %2557 = vmatmul.mubr.msk.bf16.vlgmr.msra.gmra.mrb[28].mxu0 %vm819_vm3, %v1308_v48  ;;  %2561 = vmatpush3.bf16.msra.mxu1 %v1512_v49  ;;  %2726 = vrcp.f32 %v1288_v53 }
 0x40a   : > { %2567 = vmatpush3.bf16.msra.mxu0 %v1560_v35  ;;  %2568 = vmatprep.mubr.msk.bf16.mxu0 %vm2789_vm1, %v2788_v3 }
 0x40b   : > { %2578 = vmatprep.subr.bf16.mxu0 %v2788_v3  ;;  %2562 = vmatprep.mubr.msk.bf16.mxu1 %vm2789_vm1, %v2788_v3  ;;  %v2725_v50 = vpop.eup %2724 }
 0x40c   : > { %2572 = vmatprep.subr.bf16.mxu1 %v2788_v3  ;;  %v1300_v51 = vmul.f32 %v2725_v50, %v3095_v8  ;;  %v1603_v61 = vpop.permute.xlu1 %1602 }
 0x40d   : > { %v1608_v0 = vsel %vm1318_vm4, %v1603_v61, 0 }
 0x40e   : > { %v1310_v52 = vpack.c.bf16 %v1300_v51, %v1300_v51 }
 0x411   : > { %2569 = vmatmul.mubr.msk.bf16.vlgmr.msra.gmra.mrb[32].mxu0 %vm819_vm3, %v1310_v52 }
 0x412   : > { %2580 = vmatprep.mubr.msk.bf16.mxu0 %vm2789_vm1, %v2788_v3 }
 0x413   : > { %v2727_v56 = vpop.eup %2726 }
 0x414   : > { %v1304_v23 = vmul.f32 %v2727_v56, %v3099_v10 }
 0x416   : > { %v1312_v59 = vpack.c.bf16 %v1304_v23, %v1304_v23 }
 0x42d   : > { %v1279_v55 = vpop.xlane.xlu0 %1278 }
 0x42e   : > { %2728 = vrcp.f32 %v1279_v55 }
 0x431   : > { %v1285_v22 = vpop.xlane.xlu0 %1284 }
 0x432   : > { %2730 = vrcp.f32 %v1285_v22 }
 0x435   : > { %v1651_v57 = vpop.permute.xlu0 %1650 }
 0x436   : > { %v1656_v54 = vsel %vm1318_vm4, %v1651_v57, 0 }
 0x437   : > { %2579 = vmatpush3.bf16.msra.mxu0 %v1656_v54 }
 0x438   : > { %v2729_v58 = vpop.eup %2728  ;;  %2592 = vmatprep.subr.bf16.mxu0 %v2788_v3 }
 0x439   : > { %v1298_v60 = vmul.f32 %v2729_v58, %v3109_v21 }
 0x43a   : > { %2581 = vmatmul.mubr.msk.bf16.vlgmr.msra.gmra.mrb[36].mxu0 %vm819_vm3, %v1312_v59  ;;  %v2391_v59 = vld [vmem:[%s3321_s1] ss:$0 sm:$0xff] }
 0x43b   : > { %v1309_v62 = vpack.c.bf16 %v1298_v60, %v1298_v60  ;;  %2596 = vmatprep.mubr.msk.bf16.mxu0 %vm2789_vm1, %v2788_v3 }
 0x43c   : > { %v2731_v63 = vpop.eup %2730 }
 0x43d   : > { %2563 = vmatmul.mubr.msk.bf16.vlgmr.msra.gmra.mrb[20].mxu1 %vm819_vm3, %v1309_v62  ;;  %v1302_v1 = vmul.f32 %v2731_v63, %v3113_v18 }
 0x43e   : > { %2573 = vmatpush3.bf16.msra.mxu1 %v1608_v0  ;;  %2574 = vmatprep.mubr.msk.bf16.mxu1 %vm2789_vm1, %v2788_v3 }
 0x43f   : > { %2584 = vmatprep.subr.bf16.mxu1 %v2788_v3  ;;  %v1311_v31 = vpack.c.bf16 %v1302_v1, %v1302_v1 }
 0x445   : > { %2575 = vmatmul.mubr.msk.bf16.vlgmr.msra.gmra.mrb[24].mxu1 %vm819_vm3, %v1311_v31 }
 0x446   : > { %2588 = vmatprep.mubr.msk.bf16.mxu1 %vm2789_vm1, %v2788_v3  ;;  %2585 = vmatpush3.bf16.msra.mxu1 %v2688_v26 }
 0x447   : > { %2586 = vmatprep.subr.bf16.mxu1 %v2788_v3 }
 0x44a   : > { %2587 = vmatpush3.bf16.msra.mxu1 %v2689_v36  ;;  %v2396_v36 = vld [vmem:[%s3323_s28] ss:$0 sm:$0xff] }
 0x44b   : > { %2600 = vmatprep.subr.bf16.mxu1 %v2788_v3 }
 0x482   : > { %v1356_v2 = vpop.f32.mrb[12].mxu1 }
 0x483   : > { %v1404_v4 = vpop.f32.mrb[24].mxu0  ;;  %v2540_v7 = vpop.f32.mrb[13].mxu1 }
 0x484   : > { %v2546_v8 = vpop.f32.mrb[25].mxu0  ;;  %v1359_v9 = vpop.f32.mrb[14].mxu1 }
 0x485   : > { %v1407_v10 = vpop.f32.mrb[26].mxu0  ;;  %v2541_v11 = vpop.f32.mrb[15].mxu1 }
 0x486   : > { %v2547_v12 = vpop.f32.mrb[27].mxu0 }
 0x4db   : > { %v1452_v13 = vpop.f32.mrb[16].mxu1 }
 0x4dc   : > { %v1500_v14 = vpop.f32.mrb[28].mxu0  ;;  %v2552_v15 = vpop.f32.mrb[17].mxu1 }
 0x4dd   : > { %v2671_v16 = vpack.i.bf16 %v1500_v14, %v1452_v13  ;;  %v2558_v17 = vpop.f32.mrb[29].mxu0  ;;  %v1455_v19 = vpop.f32.mrb[18].mxu1 }
 0x4de   : > { %v1503_v20 = vpop.f32.mrb[30].mxu0  ;;  %v2553_v21 = vpop.f32.mrb[19].mxu1  ;;  %v2691_v17 = vld [vmem:[%s2934_s18 + $0x8] sm:$0xff]   ;;  %v2692_v19 = vld [vmem:[%s2944_s17] sm:$0xff]  }
 0x4df   : > { %2672 = vrot.lane.b32.xlu1 %v2671_v16, %s2795_s19  ;;  %v2559_v24 = vpop.f32.mrb[31].mxu0  ;;  %v2690_v16 = vld [vmem:[%s2934_s18] sm:$0xff]   ;;  %v2693_v20 = vld [vmem:[%s2944_s17 + $0x8] sm:$0xff]  }
 0x4e0   : > { %2593 = vmatpush3.bf16.msra.mxu0 %v2690_v16 }
 0x4e1   : > { %2594 = vmatprep.subr.bf16.mxu0 %v2788_v3 }
 0x4e4   : > { %v1596_v25 = vpop.f32.mrb[32].mxu0  ;;  %2595 = vmatpush3.bf16.msra.mxu0 %v2691_v17 }
 0x4e5   : > { %v2570_v30 = vpop.f32.mrb[33].mxu0 }
 0x4e6   : > { %v1599_v18 = vpop.f32.mrb[34].mxu0 }
 0x4e7   : > { %v2571_v34 = vpop.f32.mrb[35].mxu0 }
 0x50d   : > { %v1692_v27 = vpop.f32.mrb[36].mxu0 }
 0x50e   : > { %v2582_v28 = vpop.f32.mrb[37].mxu0 }
 0x50f   : > { %v1695_v29 = vpop.f32.mrb[38].mxu0  ;;  %v2395_v28 = vld [vmem:[%s3322_s21] ss:$0 sm:$0xff] }
 0x510   : > { %v1548_v32 = vpop.f32.mrb[20].mxu1  ;;  %v2583_v33 = vpop.f32.mrb[39].mxu0 }
 0x511   : > { %v2676_v37 = vpack.i.bf16 %v1596_v25, %v1548_v32  ;;  %v2564_v38 = vpop.f32.mrb[21].mxu1 }
 0x512   : > { %v1551_v39 = vpop.f32.mrb[22].mxu1 }
 0x513   : > { %v2565_v40 = vpop.f32.mrb[23].mxu1  ;;  %2677 = vrot.lane.b32.xlu0 %v2676_v37, %s2796_s20  ;;  %s3324_s20 = scalar_lea.vmem %s3293_s8, %s2904_s26 }
 0x518   : > { %v1644_v41 = vpop.f32.mrb[24].mxu1 }
 0x519   : > { %v2681_v42 = vpack.i.bf16 %v1692_v27, %v1644_v41  ;;  %v2576_v43 = vpop.f32.mrb[25].mxu1  ;;  %v2694_v41 = vld [vmem:[%s2944_s17 + $0x10] sm:$0xff]  }
 0x51a   : > { %v1647_v44 = vpop.f32.mrb[26].mxu1  ;;  %v2696_v43 = vld [vmem:[%s2944_s17 + $0x20] sm:$0xff]  }
 0x51b   : > { %v2577_v45 = vpop.f32.mrb[27].mxu1  ;;  %2682 = vrot.lane.b32.xlu1 %v2681_v42, %s2797_s24  ;;  %v2695_v42 = vld [vmem:[%s2944_s17 + $0x18] sm:$0xff]   ;;  %v2697_v44 = vld [vmem:[%s2944_s17 + $0x28] sm:$0xff]   ;;  %s3328_s24 = sld [smem:[#allocation13_spill]] (!%p2412_p5) }
 0x51c   : > { %v2698_v45 = vld [vmem:[%s2944_s17 + $0x30] sm:$0xff]  }
 0x551   : > { %v2673_v46 = vpop.permute.xlu1 %2672 }
 0x552   : > { %v2675_v48 = vunpack.i.h.bf16 %v2673_v46  ;;  %v2674_v49 = vunpack.i.l.bf16 %v2673_v46  ;;  %v2699_v46 = vld [vmem:[%s2944_s17 + $0x38] sm:$0xff]  }
 0x554   : > { %v1723_v52 = vsel %vm819_vm3, %v1404_v4, %v2675_v48  ;;  %v1722_v53 = vsel %vm819_vm3, %v1356_v2, %v2674_v49 }
 0x585   : > { %v2678_v47 = vpop.permute.xlu0 %2677 }
 0x586   : > { %v2680_v35 = vunpack.i.h.bf16 %v2678_v47  ;;  %v2679_v50 = vunpack.i.l.bf16 %v2678_v47  ;;  %v2397_v47 = vld [vmem:[%s3324_s20] ss:$0 sm:$0xff] }
 0x588   : > { %v1726_v22 = vsel %vm1724_vm5, %v1723_v52, %v2680_v35  ;;  %v1725_v23 = vsel %vm1724_vm5, %v1722_v53, %v2679_v50 }
 0x58d   : > { %v2683_v51 = vpop.permute.xlu1 %2682 }
 0x58e   : > { %v2685_v55 = vunpack.i.h.bf16 %v2683_v51  ;;  %v2684_v56 = vunpack.i.l.bf16 %v2683_v51 }
 0x590   : > { %v1729_v57 = vsel %vm1727_vm6, %v1726_v22, %v2685_v55  ;;  %v1728_v54 = vsel %vm1727_vm6, %v1725_v23, %v2684_v56 }
 0x591   : > { %v1730_v58 = vpack.c.bf16 %v1729_v57, %v1728_v54 }
 0x593   : > { %2589 = vmatmul.mubr.msk.bf16.vlgmr.msra.gmra.mrb[28].mxu1 %vm743_vm2, %v1730_v58 }
 0x594   : > { %2616 = vmatprep.mubr.msk.bf16.mxu1 %vm2789_vm1, %v2788_v3  ;;  %2601 = vmatpush3.bf16.msra.mxu1 %v2692_v19 }
 0x595   : > { %2602 = vmatprep.subr.bf16.mxu1 %v2788_v3 }
 0x598   : > { %2603 = vmatpush3.bf16.msra.mxu1 %v2693_v20 }
 0x599   : > { %2604 = vmatprep.subr.bf16.mxu1 %v2788_v3 }
 0x59c   : > { %2605 = vmatpush3.bf16.msra.mxu1 %v2694_v41 }
 0x59d   : > { %2606 = vmatprep.subr.bf16.mxu1 %v2788_v3 }
 0x5a0   : > { %2607 = vmatpush3.bf16.msra.mxu1 %v2695_v42 }
 0x5a1   : > { %2608 = vmatprep.subr.bf16.mxu1 %v2788_v3 }
 0x5a4   : > { %2609 = vmatpush3.bf16.msra.mxu1 %v2696_v43 }
 0x5a5   : > { %2610 = vmatprep.subr.bf16.mxu1 %v2788_v3 }
 0x5a8   : > { %2611 = vmatpush3.bf16.msra.mxu1 %v2697_v44 }
 0x5a9   : > { %2612 = vmatprep.subr.bf16.mxu1 %v2788_v3 }
 0x5ac   : > { %2613 = vmatpush3.bf16.msra.mxu1 %v2698_v45 }
 0x5ad   : > { %2614 = vmatprep.subr.bf16.mxu1 %v2788_v3 }
 0x5b0   : > { %2615 = vmatpush3.bf16.msra.mxu1 %v2699_v46 }
 0x666   : > { %v1791_v60 = vpop.f32.mrb[28].mxu1 }
 0x667   : > { %v1792_v61 = vadd.f32 %v2391_v59, %v1791_v60  ;;  %v2590_v62 = vpop.f32.mrb[29].mxu1 }
 0x668   : > { %v1794_v63 = vpop.f32.mrb[30].mxu1 }
 0x669   : > { %v1795_v0 = vadd.f32 %v2391_v59, %v1794_v63  ;;  %v2591_v1 = vpop.f32.mrb[31].mxu1  ;;  %v1798_v31 = vadd.f32 %v1792_v61, %v2969_v5  ;;  %v2401_v61 = vld [vmem:[%s700_s15] ss:$0 sm:$0xff] }
 0x66b   : > { %v1802_v2 = vsel %vm743_vm2, %v1798_v31, 0.0  ;;  %v1799_v4 = vadd.f32 %v1795_v0, %v2971_v6 }
 0x66c   : > { %1803 = vadd.xlane.f32.xlu0 %v1802_v2 }
 0x66d   : > { %v1805_v7 = vsel %vm743_vm2, %v1799_v4, 0.0 }
 0x66e   : > { %1806 = vadd.xlane.f32.xlu1 %v1805_v7 }
 0x6f9   : > { %v1804_v8 = vpop.xlane.xlu0 %1803 }
 0x6fa   : > { %v1809_v9 = vmul.f32 0.03125, %v1804_v8 }
 0x6fb   : > { %v1807_v10 = vpop.xlane.xlu1 %1806 }
 0x6fc   : > { %v1811_v11 = vsub.f32 %v1798_v31, %v1809_v9  ;;  %v1810_v12 = vmul.f32 0.03125, %v1807_v10 }
 0x6fe   : > { %v1812_v13 = vsub.f32 %v1799_v4, %v1810_v12  ;;  %v1813_v14 = vmul.f32 %v1811_v11, %v1811_v11 }
 0x700   : > { %v1815_v5 = vsel %vm743_vm2, %v1813_v14, 0.0  ;;  %v1814_v15 = vmul.f32 %v1812_v13, %v1812_v13 }
 0x701   : > { %1816 = vadd.xlane.f32.xlu0 %v1815_v5 }
 0x702   : > { %v1818_v6 = vsel %vm743_vm2, %v1814_v15, 0.0 }
 0x705   : > { %1819 = vadd.xlane.f32.xlu0 %v1818_v6 }
 0x78e   : > { %v1817_v21 = vpop.xlane.xlu0 %1816 }
 0x78f   : > { %v1821_v24 = vmul.f32 0.03125, %v1817_v21 }
 0x791   : > { %v1823_v25 = vadd.f32 1e-05, %v1821_v24 }
 0x792   : > { %v1820_v30 = vpop.xlane.xlu0 %1819 }
 0x793   : > { %2732 = vrsqrt.f32 %v1823_v25  ;;  %v1822_v18 = vmul.f32 0.03125, %v1820_v30 }
 0x795   : > { %v1824_v34 = vadd.f32 1e-05, %v1822_v18 }
 0x797   : > { %2734 = vrsqrt.f32 %v1824_v34  ;;  %v2410_v34 = vld [vmem:[%s703_s0] ss:$0 sm:$0xff]  ;;  %s3325_s0 = sld [smem:[#allocation12_spill]] (!%p2412_p5) }
 0x79d   : > { %v2733_v26 = vpop.eup %2732 }
 0x79e   : > { %v1827_v27 = vmul.f32 %v2733_v26, %v1811_v11 }
 0x7a0   : > { %v1835_v32 = vmul.f32 %v2395_v28, %v1827_v27 }
 0x7a1   : > { %v2735_v29 = vpop.eup %2734 }
 0x7a2   : > { %v1828_v33 = vmul.f32 %v2735_v29, %v1812_v13  ;;  %v1843_v38 = vadd.f32 %v2396_v36, %v1835_v32 }
 0x7a4   : > { %v1836_v37 = vmul.f32 %v2395_v28, %v1828_v33  ;;  %v2411_v28 = vld [vmem:[%s706_s13] ss:$0 sm:$0xff] }
 0x7a6   : > { %v1844_v39 = vadd.f32 %v2396_v36, %v1836_v37 }
 0x7a8   : > { %v1845_v40 = vpack.c.bf16 %v1844_v39, %v1843_v38 }
 0x7aa   : > { %2597 = vmatmul.mubr.msk.bf16.vlgmr.msra.gmra.mrb[40].mxu0 %vm743_vm2, %v1845_v40 }
 0x87d   : > { %v1906_v48 = vpop.f32.mrb[40].mxu0 }
 0x87e   : > { %v1907_v49 = vadd.f32 %v2397_v47, %v1906_v48  ;;  %v2598_v35 = vpop.f32.mrb[41].mxu0 }
 0x87f   : > { %v1909_v50 = vpop.f32.mrb[42].mxu0  ;;  %v2744_v35 = vld [vmem:[%s3325_s0] sm:$0xff] (!%p2412_p5)  }
 0x880   : > { %v1915_v51 = vmul.f32 0.70710677, %v1907_v49  ;;  %v1910_v52 = vadd.f32 %v2397_v47, %v1909_v50  ;;  %v2599_v53 = vpop.f32.mrb[43].mxu0  ;;  %v1913_v23 = vmul.f32 0.5, %v1907_v49  ;;  %v2798_v50 = vmov (!%p2412_p5), 0.0  }
 0x881   : > { %2620 = vmatprep.subr.bf16.mxu0 (!%p2412_p5), %v2798_v50  ;;  %2624 = vmatprep.mubr.msk.bf16.mxu0 (!%p2412_p5), %vm2799_vm7, %v2798_v50 }
 0x882   : > { %2736 = verf.f32 %v1915_v51  ;;  %v1916_v55 = vmul.f32 0.70710677, %v1910_v52  ;;  %v1914_v57 = vmul.f32 0.5, %v1910_v52  ;;  %2621 = vmatpush3.bf16.msra.mxu0 (!%p2412_p5), %v2744_v35  ;;  %v2745_v51 = vld [vmem:[%s3325_s0 + $0x8] sm:$0xff] (!%p2412_p5)  }
 0x883   : > { %2622 = vmatprep.subr.bf16.mxu0 (!%p2412_p5), %v2798_v50 }
 0x884   : > { %2738 = verf.f32 %v1916_v55 }
 0x886   : > { %2623 = vmatpush3.bf16.msra.mxu0 (!%p2412_p5), %v2745_v51 }
 0x88c   : > { %v2737_v56 = vpop.eup %2736 }
 0x88d   : > { %v1919_v3 = vadd.f32 1.0, %v2737_v56 }
 0x88e   : > { %v2739_v22 = vpop.eup %2738 }
 0x88f   : > { %v1920_v54 = vadd.f32 1.0, %v2739_v22  ;;  %v1921_v58 = vmul.f32 %v1919_v3, %v1913_v23 }
 0x891   : > { %v1922_v59 = vmul.f32 %v1920_v54, %v1914_v57  ;;  %v2413_v54 = vld [vmem:[%s3326_s16] ss:$0 sm:$0xff] (!%p2412_p5) }
 0x893   : > { %v1923_v60 = vpack.c.bf16 %v1922_v59, %v1921_v58 }
 0x895   : > { %2617 = vmatmul.mubr.bf16.vlgmr.msra.gmra.mrb[32].mxu1 %v1923_v60 }
 0x968   : > { %v2029_v62 = vpop.f32.mrb[32].mxu1 }
 0x969   : > { %v2030_v63 = vadd.f32 %v2401_v61, %v2029_v62  ;;  %v2618_v0 = vpop.f32.mrb[33].mxu1 }
 0x96a   : > { %v2032_v1 = vpop.f32.mrb[34].mxu1 }
 0x96b   : > { %v2033_v31 = vadd.f32 %v2401_v61, %v2032_v1  ;;  %v2619_v2 = vpop.f32.mrb[35].mxu1  ;;  %v2036_v4 = vadd.f32 %v2030_v63, %v1843_v38  ;;  %v2414_v61 = vld [vmem:[%s3327_s30] ss:$0 sm:$0xff] (!%p2412_p5) }
 0x96d   : > { %v2040_v7 = vsel %vm743_vm2, %v2036_v4, 0.0  ;;  %v2037_v8 = vadd.f32 %v2033_v31, %v1844_v39  ;;  %v2415_v31 = vld [vmem:[%s3328_s24] ss:$0 sm:$0xff] (!%p2412_p5) }
 0x96e   : > { %2041 = vadd.xlane.f32.xlu1 %v2040_v7 }
 0x96f   : > { %v2043_v9 = vsel %vm743_vm2, %v2037_v8, 0.0 }
 0x970   : > { %2044 = vadd.xlane.f32.xlu0 %v2043_v9 }
 0x9fb   : > { %v2042_v10 = vpop.xlane.xlu1 %2041 }
 0x9fc   : > { %v2046_v11 = vmul.f32 0.03125, %v2042_v10 }
 0x9fd   : > { %v2045_v12 = vpop.xlane.xlu0 %2044 }
 0x9fe   : > { %v2048_v13 = vsub.f32 %v2036_v4, %v2046_v11  ;;  %v2047_v14 = vmul.f32 0.03125, %v2045_v12 }
 0xa00   : > { %v2049_v5 = vsub.f32 %v2037_v8, %v2047_v14  ;;  %v2050_v15 = vmul.f32 %v2048_v13, %v2048_v13 }
 0xa02   : > { %v2052_v6 = vsel %vm743_vm2, %v2050_v15, 0.0  ;;  %v2051_v16 = vmul.f32 %v2049_v5, %v2049_v5 }
 0xa03   : > { %2053 = vadd.xlane.f32.xlu1 %v2052_v6 }
 0xa04   : > { %v2055_v17 = vsel %vm743_vm2, %v2051_v16, 0.0 }
 0xa05   : > { %2056 = vadd.xlane.f32.xlu0 %v2055_v17 }
 0xa90   : > { %v2054_v19 = vpop.xlane.xlu1 %2053 }
 0xa91   : > { %v2058_v20 = vmul.f32 0.03125, %v2054_v19 }
 0xa92   : > { %v2057_v21 = vpop.xlane.xlu0 %2056 }
 0xa93   : > { %v2060_v24 = vadd.f32 1e-05, %v2058_v20  ;;  %v2059_v25 = vmul.f32 0.03125, %v2057_v21 }
 0xa95   : > { %2740 = vrsqrt.f32 %v2060_v24  ;;  %v2061_v30 = vadd.f32 1e-05, %v2059_v25 }
 0xa97   : > { %2742 = vrsqrt.f32 %v2061_v30 }
 0xa9f   : > { %v2741_v18 = vpop.eup %2740 }
 0xaa0   : > { %v2064_v26 = vmul.f32 %v2741_v18, %v2048_v13 }
 0xaa1   : > { %v2743_v27 = vpop.eup %2742 }
 0xaa2   : > { %v2072_v29 = vmul.f32 %v2410_v34, %v2064_v26  ;;  %v2065_v32 = vmul.f32 %v2743_v27, %v2049_v5  ;;  %2087 = sbr.rel (%p2412_p5) target bundleno = 3262 (0xcbe), region = 96 }
 0xaa4   : > { %v2080_v33 = vadd.f32 %v2411_v28, %v2072_v29  ;;  %v2073_v36 = vmul.f32 %v2410_v34, %v2065_v32 }
 0xaa6   : > { %2082 = vst.msk [vmem:[#allocation2] sm:$0xff] %vm743_vm2, %v2080_v33  ;;  %v2081_v37 = vadd.f32 %v2411_v28, %v2073_v36  ;;  %v2090_v38 = vsel (!%p2412_p5), %vm743_vm2, %v2080_v33, 0.0 }
 0xaa7   : > { %2091 = vadd.xlane.f32.xlu0 (!%p2412_p5), %v2090_v38 }
 0xaa8   : > { %2083 = vst.msk [vmem:[#allocation2 + $0x8] sm:$0xff] %vm743_vm2, %v2081_v37  ;;  %v2093_v39 = vsel (!%p2412_p5), %vm743_vm2, %v2081_v37, 0.0 }
 0xaab   : > { %2094 = vadd.xlane.f32.xlu0 %v2093_v39 }
 0xb34   : > { %v2092_v40 = vpop.xlane.xlu0 %2091 }
 0xb35   : > { %v2096_v41 = vmul.f32 0.03125, %v2092_v40 }
 0xb37   : > { %v2098_v42 = vsub.f32 %v2080_v33, %v2096_v41 }
 0xb38   : > { %v2095_v43 = vpop.xlane.xlu0 %2094 }
 0xb39   : > { %v2097_v44 = vmul.f32 0.03125, %v2095_v43  ;;  %v2100_v45 = vmul.f32 %v2098_v42, %v2098_v42 }
 0xb3b   : > { %v2099_v46 = vsub.f32 %v2081_v37, %v2097_v44  ;;  %v2102_v47 = vsel %vm743_vm2, %v2100_v45, 0.0 }
 0xb3c   : > { %2103 = vadd.xlane.f32.xlu1 %v2102_v47 }
 0xb3d   : > { %v2101_v48 = vmul.f32 %v2099_v46, %v2099_v46 }
 0xb3f   : > { %v2105_v49 = vsel %vm743_vm2, %v2101_v48, 0.0 }
 0xb40   : > { %2106 = vadd.xlane.f32.xlu1 %v2105_v49 }
 0xbc9   : > { %v2104_v52 = vpop.xlane.xlu1 %2103 }
 0xbca   : > { %v2108_v53 = vmul.f32 0.03125, %v2104_v52 }
 0xbcc   : > { %v2110_v55 = vadd.f32 1e-05, %v2108_v53 }
 0xbcd   : > { %v2107_v56 = vpop.xlane.xlu1 %2106 }
 0xbce   : > { %2746 = vrsqrt.f32 %v2110_v55  ;;  %v2109_v3 = vmul.f32 0.03125, %v2107_v56 }
 0xbd0   : > { %v2111_v22 = vadd.f32 1e-05, %v2109_v3 }
 0xbd2   : > { %2748 = vrsqrt.f32 %v2111_v22 }
 0xbd8   : > { %v2747_v23 = vpop.eup %2746 }
 0xbd9   : > { %v2114_v57 = vmul.f32 %v2747_v23, %v2098_v42 }
 0xbdb   : > { %v2122_v60 = vmul.f32 %v2413_v54, %v2114_v57 }
 0xbdc   : > { %v2749_v58 = vpop.eup %2748 }
 0xbdd   : > { %v2115_v59 = vmul.f32 %v2749_v58, %v2099_v46  ;;  %v2130_v63 = vadd.f32 %v2414_v61, %v2122_v60 }
 0xbdf   : > { %v2123_v62 = vmul.f32 %v2413_v54, %v2115_v59 }
 0xbe1   : > { %v2131_v0 = vadd.f32 %v2414_v61, %v2123_v62 }
 0xbe3   : > { %v2132_v1 = vpack.c.bf16 %v2131_v0, %v2130_v63 }
 0xbe5   : > { %2625 = vmatmul.mubr.msk.bf16.vlgmr.msra.gmra.mrb[0].mxu0 %vm743_vm2, %v2132_v1 }
 0xcb8   : > { %v2193_v2 = vpop.f32.mrb[0].mxu0 }
 0xcb9   : > { %v2194_v4 = vadd.f32 %v2415_v31, %v2193_v2  ;;  %v2626_v7 = vpop.f32.mrb[1].mxu0 }
 0xcba   : > { %v2196_v8 = vpop.f32.mrb[2].mxu0 }
 0xcbb   : > { %2200 = vst [vmem:[#allocation3] sm:$0xff] %v2194_v4  ;;  %v2197_v9 = vadd.f32 %v2415_v31, %v2196_v8  ;;  %v2627_v10 = vpop.f32.mrb[3].mxu0 }
 0xcbd   : > { %2201 = vst [vmem:[#allocation3 + $0x8] sm:$0xff] %v2197_v9 }
 0xcbe PF: > { %p2632_p6 = scmp.eq.s32.totalorder %s2898_s25, 1  ;;  %s2800_s15 = smov [#allocation3]  }
 0xcbf   : > { %s2208_s22 = sshll.u32 %s2800_s15, 4  ;;  %s2209_s22 = int_to_ptr.vmem [resolvable:$true] %s2208_s22 }
 0xcc0   : > { %s2750_s3 = scalar_lea.vmem %s2209_s22, 256  ;;  %p2757_p10 = scmp.lt.s32.totalorder %s2209_s22, %s2209_s22 }
 0xcc1   : > { %p2751_p7 = scmp.ne.s32.totalorder %s2209_s22, %s2750_s3  ;;  %p2758_p11 = scmp.lt.s32.totalorder %s2750_s3, %s2750_s3 }
 0xcc3   : > { %p2752_p8 = pnand %p2751_p7, %p2632_p6  ;;  %p2759_p12 = por %p2758_p11, %p2757_p10 }
 0xcc5   : > { %p2753_p9 = pneg %p2752_p8 }
 0xcc7   : > { %p2760_p13 = pnand %p2759_p12, %p2753_p9 }
 0xcc9   : > { %2763 = shalt.err (!%p2760_p13)
}
 0xcca   : > { %s3329_s26 = sld [smem:[#allocation14_spill]] }
 0xcd0   : > { %s2764_s18 = scalar_lea.hbm %s3329_s26, 256 }
 0xcd1   : > { %p2765_p0 = scmp.ne.s32.totalorder %s3329_s26, %s2764_s18  ;;  %p2770_p3 = scmp.lt.u32.totalorder %s2764_s18, %s3329_s26 }
 0xcd3   : > { %p2766_p1 = pnand %p2765_p0, %p2632_p6 }
 0xcd5   : > { %p2767_p2 = pneg %p2766_p1 }
 0xcd7   : > { %p2772_p4 = pnand %p2770_p3, %p2767_p2 }
 0xcd9   : > { %2775 = shalt.err (!%p2772_p4)
}
 0xcda   : > { %s2801_s28 = smov 128  }
 0xcdb   : > { %2629 = dma.vmem_to_hbm [thread:$0]  (%p2632_p6), %s2209_s22, 256, %s3329_s26, [#allocation4], %s2801_s28, %s2801_s28, %s2795_s19  }
 0xcdc   : > { %2781 = dma.done.wait (%p2632_p6), [#allocation4], 256  }
 0xcdd   : > { %2783 = vsyncadd (%p2632_p6), [#allocation4], 4294967040 }
 0xcde PF: > { %s3330_s20 = sld [smem:[#allocation6_spill]] }
 0xce4   : > { %s28_s24 = sadd.s32 1, %s3330_s20  }
 0xce5   : > { %p25_p5 = scmp.ge.s32.totalorder %s28_s24, 4  }
 0xce7   :  { %27 = sbr.rel (!%p25_p5) target bundleno = 10 (0xa), region = 156 }
 0xcee   :  { %2224 = vsyncpa [#allocation4], 1 }
 0xcef   :  { %2226 = vsyncpa [#allocation4 + $0x1], 1 }

</bundles_post_ra>
